<compile_context>
chip_gen: v7x
topology: tpu7x:2x2x1
jax: 0.10.0
libtpu: 0.0.40
codegen_flags: <defaults>
</compile_context>

<pallas_src>
import functools

import jax
import jax.numpy as jnp
from jax.experimental import pallas as pl
from jax.experimental.pallas import tpu as pltpu


def _round_up(x, m):
    return ((x + m - 1) // m) * m


def _prepare_tables(node_emb, params, compute_dtype):
    """Fuse both towers and fold layer-1 into the gather table (built once, outside the kernel)."""
    f32 = jnp.float32
    N, _ = node_emb.shape
    H = params["w2s"].shape[1]
    out_dim = params["wf"].shape[1]
    Hp = _round_up(2 * H, 128)        # lane-dense fused tower width
    G = _round_up(2 * N, 8)           # gather-table rows: [src block | dst block]

    # g1[i, :H]       = node_emb[i] @ w1s   (src tower, layer 1)
    # g1[N+j, H:2H]   = node_emb[j] @ w1d   (dst tower, layer 1)
    g1 = jnp.zeros((G, Hp), f32)
    g1 = g1.at[:N, :H].set(node_emb @ params["w1s"])
    g1 = g1.at[N:2 * N, H:2 * H].set(node_emb @ params["w1d"])
    g1 = g1.astype(compute_dtype)

    b1 = (jnp.zeros((1, Hp), f32)
          .at[:, :H].set(params["b1s"])
          .at[:, H:2 * H].set(params["b1d"]))

    w2 = jnp.zeros((Hp, Hp), f32)
    w2 = w2.at[:H, :H].set(params["w2s"]).at[H:2 * H, H:2 * H].set(params["w2d"])
    w2 = w2.astype(compute_dtype)
    b2 = (jnp.zeros((1, Hp), f32)
          .at[:, :H].set(params["b2s"])
          .at[:, H:2 * H].set(params["b2d"]))

    wf = jnp.zeros((Hp, out_dim), f32).at[:2 * H, :].set(params["wf"]).astype(compute_dtype)
    bf = params["bf"].astype(f32).reshape(1, out_dim)
    return g1, b1, w2, b2, wf, bf


def post_pro_kernel(idx_ref, g1_ref, b1_ref, w2_ref, b2_ref, wf_ref, bf_ref,
                    out_ref, *, n_nodes):
    """One edge tile: fused gather+layer1 -> ReLU -> layer2 -> concat-fusion linear."""
    tile_e = idx_ref.shape[0]
    G = g1_ref.shape[0]
    cdt = g1_ref.dtype               # compute dtype (bf16)
    f32 = jnp.float32

    # --- single one-hot over the fused [src | dst] table (layer 1 pre-folded) ---
    idx = idx_ref[...]                                               # (tile_e, 2) int32
    col = jax.lax.broadcasted_iota(jnp.int32, (tile_e, G), 1)
    onehot = ((col == idx[:, 0:1]) | (col == idx[:, 1:2] + n_nodes)).astype(cdt)

    # h = [x_src @ w1s | x_dst @ w1d] + b1  (one MXU pass; exact row selection)
    h = jnp.dot(onehot, g1_ref[...], preferred_element_type=f32) + b1_ref[...]
    h = jnp.maximum(h, 0.0).astype(cdt)        # ReLU; Dropout(0.5) is identity in eval

    # layer 2 of both towers (block-diagonal weights, lane-dense width)
    emb = (jnp.dot(h, w2_ref[...], preferred_element_type=f32) + b2_ref[...]).astype(cdt)

    # "concat" fusion head; store only the real out_dim columns (small writeback)
    score = jnp.dot(emb, wf_ref[...], preferred_element_type=f32) + bf_ref[...]
    out_ref[...] = score.astype(out_ref.dtype)


def post_pro_forward(node_emb, samples, params, *, tile_e=1024,
                     compute_dtype=jnp.bfloat16):
    """Post_Pro forward. node_emb: [N, H*L] f32, samples: [E, 2] int32 -> [E, out_dim] f32."""
    N, _ = node_emb.shape
    out_dim = params["wf"].shape[1]
    E = samples.shape[0]

    # The in-kernel gather uses a (tile_e, 2N) one-hot on the MXU; it scales
    # linearly with the node count, so gate it to small tables.
    # TODO(synk): for larger node tables switch to a scalar-prefetched per-row
    #             DMA gather (PrefetchScalarGridSpec + manual make_async_copy).
    assert N <= 2048, "one-hot MXU gather path is gated to small node tables"

    g1, b1, w2, b2, wf, bf = _prepare_tables(node_emb, params, compute_dtype)
    G, Hp = g1.shape

    # --- edge tile sizing --------------------------------------------------------
    tile_e = max(8, (int(tile_e) // 8) * 8)
    # keep the (tile_e, G) one-hot temporaries to a few MiB of VMEM / vregs
    tile_e = min(tile_e, max(64, ((8 << 20) // (G * 6)) // 8 * 8))
    # at least 2 grid steps when E allows (megacore sharding on v7x, pipeline depth)
    tile_e = min(tile_e, max(8, _round_up((E + 1) // 2, 8)))
    E_pad = _round_up(E, tile_e)
    grid = (E_pad // tile_e,)

    samples = samples.astype(jnp.int32)
    if E_pad != E:
        samples = jnp.zeros((E_pad, 2), jnp.int32).at[:E].set(samples)  # pad -> node 0

    # --- generation-aware VMEM budget (v7x only has 64 MiB physical) --------------
    itemsize = jnp.dtype(compute_dtype).itemsize
    const_bytes = ((g1.size + w2.size + wf.size) * itemsize
                   + (b1.size + b2.size + bf.size) * 4)
    stream_bytes = tile_e * (2 * 4 + out_dim * 4)
    tmp_bytes = tile_e * (2 * G + 4 * Hp) * 4          # one-hot + h/emb temporaries
    vmem_limit = max(2 * const_bytes + 4 * stream_bytes + tmp_bytes + (4 << 20), 16 << 20)
    try:
        vmem_cap = getattr(pltpu.get_tpu_info(), "vmem_capacity_bytes", 64 << 20)
    except Exception:  # query unavailable (e.g. interpret mode)
        vmem_cap = 64 << 20
    vmem_limit = int(min(vmem_limit, (vmem_cap * 5) // 8, 40 << 20))

    # advisory cost estimate so XLA schedules wrapper-side prep around the kernel
    cost = pl.CostEstimate(
        flops=2 * E_pad * (G * Hp + Hp * Hp + Hp * out_dim),
        transcendentals=0,
        bytes_accessed=int(E_pad * 2 * 4 + const_bytes + E_pad * out_dim * 4),
    )

    def _full(shape):
        nd = len(shape)
        return pl.BlockSpec(shape, lambda i, _nd=nd: (0,) * _nd)

    out = pl.pallas_call(
        functools.partial(post_pro_kernel, n_nodes=N),
        out_shape=jax.ShapeDtypeStruct((E_pad, out_dim), jnp.float32),
        grid_spec=pltpu.PrefetchScalarGridSpec(
            num_scalar_prefetch=0,
            grid=grid,
            in_specs=[
                pl.BlockSpec((tile_e, 2), lambda i: (i, 0)),   # edge (src, dst) indices
                _full(g1.shape), _full(b1.shape),              # fused gather + layer-1 table
                _full(w2.shape), _full(b2.shape),              # fused layer-2 weights
                _full(wf.shape), _full(bf.shape),              # fusion head
            ],
            out_specs=pl.BlockSpec((tile_e, out_dim), lambda i: (i, 0)),
        ),
        compiler_params=pltpu.CompilerParams(
            dimension_semantics=("parallel",),
            vmem_limit_bytes=vmem_limit),
        cost_estimate=cost,
    )(samples, g1, b1, w2, b2, wf, bf)

    return out[:E]


def init_params(key, hidden_dim, out_dim, layer):
    """Deterministic synthetic weights; layout (in_dim, out_dim) for each Linear."""
    in_dim = hidden_dim * layer
    ks = jax.random.split(key, 10)
    scale = 0.1
    return {
        "w1s": scale * jax.random.normal(ks[0], (in_dim, hidden_dim), jnp.float32),
        "b1s": scale * jax.random.normal(ks[1], (1, hidden_dim), jnp.float32),
        "w2s": scale * jax.random.normal(ks[2], (hidden_dim, hidden_dim), jnp.float32),
        "b2s": scale * jax.random.normal(ks[3], (1, hidden_dim), jnp.float32),
        "w1d": scale * jax.random.normal(ks[4], (in_dim, hidden_dim), jnp.float32),
        "b1d": scale * jax.random.normal(ks[5], (1, hidden_dim), jnp.float32),
        "w2d": scale * jax.random.normal(ks[6], (hidden_dim, hidden_dim), jnp.float32),
        "b2d": scale * jax.random.normal(ks[7], (1, hidden_dim), jnp.float32),
        "wf":  scale * jax.random.normal(ks[8], (2 * hidden_dim, out_dim), jnp.float32),
        "bf":  scale * jax.random.normal(ks[9], (1, out_dim), jnp.float32),
    }


def reference_forward(node_emb, samples, p):
    """Pure-JAX f32 reference with the original module's semantics (eval-mode dropout)."""
    xs = node_emb[samples[:, 0]]
    xd = node_emb[samples[:, 1]]

    def tower(x, w1, b1, w2, b2):
        h = jnp.maximum(x @ w1 + b1, 0.0)     # Linear -> ReLU -> Dropout(identity)
        return h @ w2 + b2

    src = tower(xs, p["w1s"], p["b1s"], p["w2s"], p["b2s"])
    dst = tower(xd, p["w1d"], p["b1d"], p["w2d"], p["b2d"])
    emb = jnp.concatenate([src, dst], axis=-1)
    return emb @ p["wf"] + p["bf"]


def matched_reference(node_emb, samples, p, *, compute_dtype=jnp.bfloat16):
    """Pure-JAX reference using the SAME fused / bf16-quantized tables as the kernel."""
    f32 = jnp.float32
    N = node_emb.shape[0]
    g1, b1, w2, b2, wf, bf = _prepare_tables(node_emb, p, compute_dtype)
    h = g1[samples[:, 0]].astype(f32) + g1[N + samples[:, 1]].astype(f32) + b1
    h = jnp.maximum(h, 0.0).astype(compute_dtype)
    emb = (jnp.dot(h, w2, preferred_element_type=f32) + b2).astype(compute_dtype)
    return jnp.dot(emb, wf, preferred_element_type=f32) + bf


if __name__ == "__main__":
    hidden_dim = 32
    layer = 2
    out_dim = 8
    num_nodes = 64
    num_edges = 1000          # deliberately not a multiple of the tile (tests padding)

    key = jax.random.PRNGKey(0)
    k_emb, k_smp, k_par = jax.random.split(key, 3)

    node_emb = jax.random.normal(k_emb, (num_nodes, hidden_dim * layer), jnp.float32)
    samples = jax.random.randint(k_smp, (num_edges, 2), 0, num_nodes, jnp.int32)
    params = init_params(k_par, hidden_dim, out_dim, layer)

    score = post_pro_forward(node_emb, samples, params)
    score = jax.block_until_ready(score)
    assert score.shape == (num_edges, out_dim)

    # Tight check vs a reference that uses the exact same fused bf16 tables.
    ref_q = matched_reference(node_emb, samples, params, compute_dtype=jnp.bfloat16)
    err_q = float(jnp.max(jnp.abs(score - ref_q)))
    assert err_q < 2e-3, f"max abs err vs matched bf16 ref: {err_q}"

    # Loose sanity check vs full-f32 module semantics (bf16 quantization noise only).
    ref_f = reference_forward(node_emb, samples, params)
    err_f = float(jnp.max(jnp.abs(score - ref_f)))
    assert err_f < 1e-1, f"max abs err vs f32 ref: {err_f}"

    print("KERNEL_OK")
</pallas_src>

<mosaic_0001>
module attributes {stable_mosaic.version = 11 : i64} {
  func.func @post_pro_kernel(%arg0: i32, %arg1: memref<504x2xi32, #tpu.memory_space<vmem>>, %arg2: memref<128x128xbf16, #tpu.memory_space<vmem>>, %arg3: memref<1x128xf32, #tpu.memory_space<vmem>>, %arg4: memref<128x128xbf16, #tpu.memory_space<vmem>>, %arg5: memref<1x128xf32, #tpu.memory_space<vmem>>, %arg6: memref<128x8xbf16, #tpu.memory_space<vmem>>, %arg7: memref<1x8xf32, #tpu.memory_space<vmem>>, %arg8: memref<504x8xf32, #tpu.memory_space<vmem>>) attributes {dimension_semantics = [#tpu.dimension_semantics<parallel>], iteration_bounds = array<i64: 2>, scalar_prefetch = 0 : i64, scratch_operands = 0 : i64, tpu.core_type = #tpu.core_type<tc>, window_params = [{transform_indices = @transform_0, window_bounds = array<i64: 504, 2>}, {pipeline_mode = #tpu.pipeline_mode<synchronous>, transform_indices = @transform_1, window_bounds = array<i64: 128, 128>}, {pipeline_mode = #tpu.pipeline_mode<synchronous>, transform_indices = @transform_2, window_bounds = array<i64: 1, 128>}, {pipeline_mode = #tpu.pipeline_mode<synchronous>, transform_indices = @transform_3, window_bounds = array<i64: 128, 128>}, {pipeline_mode = #tpu.pipeline_mode<synchronous>, transform_indices = @transform_4, window_bounds = array<i64: 1, 128>}, {pipeline_mode = #tpu.pipeline_mode<synchronous>, transform_indices = @transform_5, window_bounds = array<i64: 128, 8>}, {pipeline_mode = #tpu.pipeline_mode<synchronous>, transform_indices = @transform_6, window_bounds = array<i64: 1, 8>}, {transform_indices = @transform_7, window_bounds = array<i64: 504, 8>}]} {
    %c0 = arith.constant 0 : index
    %c0_0 = arith.constant 0 : index
    %0 = vector.load %arg1[%c0, %c0_0] : memref<504x2xi32, #tpu.memory_space<vmem>>, vector<504x2xi32>
    %1 = tpu.iota {dimensions = array<i32: 1>} : vector<504x128xi32>
    %2 = vector.extract_strided_slice %0 {offsets = [0, 0], sizes = [504, 1], strides = [1, 1]} : vector<504x2xi32> to vector<504x1xi32>
    %3 = vector.broadcast %2 : vector<504x1xi32> to vector<504x128xi32>
    %4 = arith.cmpi eq, %1, %3 : vector<504x128xi32>
    %5 = vector.extract_strided_slice %0 {offsets = [0, 1], sizes = [504, 1], strides = [1, 1]} : vector<504x2xi32> to vector<504x1xi32>
    %c64_i32 = arith.constant 64 : i32
    %6 = vector.broadcast %c64_i32 : i32 to vector<504x1xi32>
    %7 = arith.addi %5, %6 : vector<504x1xi32>
    %8 = vector.broadcast %7 : vector<504x1xi32> to vector<504x128xi32>
    %9 = arith.cmpi eq, %1, %8 : vector<504x128xi32>
    %10 = arith.ori %4, %9 : vector<504x128xi1>
    %11 = arith.extui %10 : vector<504x128xi1> to vector<504x128xi32>
    %12 = arith.sitofp %11 : vector<504x128xi32> to vector<504x128xf32>
    %13 = arith.truncf %12 : vector<504x128xf32> to vector<504x128xbf16>
    %c0_1 = arith.constant 0 : index
    %c0_2 = arith.constant 0 : index
    %14 = vector.load %arg2[%c0_1, %c0_2] : memref<128x128xbf16, #tpu.memory_space<vmem>>, vector<128x128xbf16>
    %cst = arith.constant dense<0.000000e+00> : vector<504x128xf32>
    %15 = tpu.matmul %13, %14, %cst {dimension_numbers = #tpu.dot_dimension_numbers<[1], [0], [0], [1], [0, 0, 1, 1], [], []>} : vector<504x128xbf16>, vector<128x128xbf16>, vector<504x128xf32> -> vector<504x128xf32>
    %c0_3 = arith.constant 0 : index
    %c0_4 = arith.constant 0 : index
    %16 = vector.load %arg3[%c0_3, %c0_4] : memref<1x128xf32, #tpu.memory_space<vmem>>, vector<1x128xf32>
    %17 = vector.broadcast %16 : vector<1x128xf32> to vector<504x128xf32>
    %18 = arith.addf %15, %17 : vector<504x128xf32>
    %cst_5 = arith.constant 0.000000e+00 : f32
    %19 = vector.broadcast %cst_5 : f32 to vector<504x128xf32>
    %20 = arith.maximumf %18, %19 : vector<504x128xf32>
    %21 = arith.truncf %20 : vector<504x128xf32> to vector<504x128xbf16>
    %c0_6 = arith.constant 0 : index
    %c0_7 = arith.constant 0 : index
    %22 = vector.load %arg4[%c0_6, %c0_7] : memref<128x128xbf16, #tpu.memory_space<vmem>>, vector<128x128xbf16>
    %cst_8 = arith.constant dense<0.000000e+00> : vector<504x128xf32>
    %23 = tpu.matmul %21, %22, %cst_8 {dimension_numbers = #tpu.dot_dimension_numbers<[1], [0], [0], [1], [0, 0, 1, 1], [], []>} : vector<504x128xbf16>, vector<128x128xbf16>, vector<504x128xf32> -> vector<504x128xf32>
    %c0_9 = arith.constant 0 : index
    %c0_10 = arith.constant 0 : index
    %24 = vector.load %arg5[%c0_9, %c0_10] : memref<1x128xf32, #tpu.memory_space<vmem>>, vector<1x128xf32>
    %25 = vector.broadcast %24 : vector<1x128xf32> to vector<504x128xf32>
    %26 = arith.addf %23, %25 : vector<504x128xf32>
    %27 = arith.truncf %26 : vector<504x128xf32> to vector<504x128xbf16>
    %c0_11 = arith.constant 0 : index
    %c0_12 = arith.constant 0 : index
    %28 = vector.load %arg6[%c0_11, %c0_12] : memref<128x8xbf16, #tpu.memory_space<vmem>>, vector<128x8xbf16>
    %cst_13 = arith.constant dense<0.000000e+00> : vector<504x8xf32>
    %29 = tpu.matmul %27, %28, %cst_13 {dimension_numbers = #tpu.dot_dimension_numbers<[1], [0], [0], [1], [0, 0, 1, 1], [], []>} : vector<504x128xbf16>, vector<128x8xbf16>, vector<504x8xf32> -> vector<504x8xf32>
    %c0_14 = arith.constant 0 : index
    %c0_15 = arith.constant 0 : index
    %30 = vector.load %arg7[%c0_14, %c0_15] : memref<1x8xf32, #tpu.memory_space<vmem>>, vector<1x8xf32>
    %31 = vector.broadcast %30 : vector<1x8xf32> to vector<504x8xf32>
    %32 = arith.addf %29, %31 : vector<504x8xf32>
    %c0_16 = arith.constant 0 : index
    %c0_17 = arith.constant 0 : index
    %33 = vector.load %arg8[%c0_16, %c0_17] : memref<504x8xf32, #tpu.memory_space<vmem>>, vector<504x8xf32>
    tpu.vector_store %arg8[%c0_16, %c0_17], %32 {strides = array<i32>} : memref<504x8xf32, #tpu.memory_space<vmem>>, vector<504x8xf32>,
    return
  }
  func.func @transform_0(%arg0: i32) -> (i32, i32) {
    %c0_i32 = arith.constant 0 : i32
    %c0_i32_0 = arith.constant 0 : i32
    return %arg0, %c0_i32 : i32, i32
  }
  func.func @transform_1(%arg0: i32) -> (i32, i32) {
    %c0_i32 = arith.constant 0 : i32
    %c0_i32_0 = arith.constant 0 : i32
    %c0_i32_1 = arith.constant 0 : i32
    return %c0_i32, %c0_i32_0 : i32, i32
  }
  func.func @transform_2(%arg0: i32) -> (i32, i32) {
    %c0_i32 = arith.constant 0 : i32
    %c0_i32_0 = arith.constant 0 : i32
    %c0_i32_1 = arith.constant 0 : i32
    return %c0_i32, %c0_i32_0 : i32, i32
  }
  func.func @transform_3(%arg0: i32) -> (i32, i32) {
    %c0_i32 = arith.constant 0 : i32
    %c0_i32_0 = arith.constant 0 : i32
    %c0_i32_1 = arith.constant 0 : i32
    return %c0_i32, %c0_i32_0 : i32, i32
  }
  func.func @transform_4(%arg0: i32) -> (i32, i32) {
    %c0_i32 = arith.constant 0 : i32
    %c0_i32_0 = arith.constant 0 : i32
    %c0_i32_1 = arith.constant 0 : i32
    return %c0_i32, %c0_i32_0 : i32, i32
  }
  func.func @transform_5(%arg0: i32) -> (i32, i32) {
    %c0_i32 = arith.constant 0 : i32
    %c0_i32_0 = arith.constant 0 : i32
    %c0_i32_1 = arith.constant 0 : i32
    return %c0_i32, %c0_i32_0 : i32, i32
  }
  func.func @transform_6(%arg0: i32) -> (i32, i32) {
    %c0_i32 = arith.constant 0 : i32
    %c0_i32_0 = arith.constant 0 : i32
    %c0_i32_1 = arith.constant 0 : i32
    return %c0_i32, %c0_i32_0 : i32, i32
  }
  func.func @transform_7(%arg0: i32) -> (i32, i32) {
    %c0_i32 = arith.constant 0 : i32
    %c0_i32_0 = arith.constant 0 : i32
    return %arg0, %c0_i32 : i32, i32
  }
}

</mosaic_0001>

<bundles_post_ra>
// kernel: tpu_custom_call.1
= control target key start
LH: loop header
LB: loop body
LE: loop exit
PB: predicated region body
PF: predicated region fallthrough
CT: control target
= control target key end

     0   :  { %s3148_s24 = smov 0   ;;  %s4096_s0 = inlined_call_operand.vmem [shape: s32[1008,2], index: 0, kind: input, shape index: {}]   ;;  %s4097_s1 = inlined_call_operand.vmem [shape: bf16[128,128], index: 1, kind: input, shape index: {}]   ;;  %s4098_s2 = inlined_call_operand.vmem [shape: f32[1,128], index: 2, kind: input, shape index: {}]   ;;  %s4099_s3 = inlined_call_operand.vmem [shape: bf16[128,128], index: 3, kind: input, shape index: {}]   ;;  %s4100_s4 = inlined_call_operand.vmem [shape: f32[1,128], index: 4, kind: input, shape index: {}]   ;;  %s4101_s5 = inlined_call_operand.vmem [shape: bf16[128,8], index: 5, kind: input, shape index: {}]   ;;  %s4102_s6 = inlined_call_operand.vmem [shape: f32[1,8], index: 6, kind: input, shape index: {}]   ;;  %s4103_s7 = inlined_call_operand.vmem [shape: f32[1008,8], index: 7, kind: output, shape index: {}]  }
   0x1 LB: > { %s2460_s25 = sadd.s32 4294967295, %s3103_s24   ;;  %p2464_p0 = scmp.ge.s32.totalorder %s3103_s24, 1  ;;  %s3103_s24 = sphi %s3148_s24, %s17_s24  }
   0x2   : > { %p238_p1 = scmp.lt.s32.totalorder %s3103_s24, 3 }
   0x4   : > { %p239_p2 = pnand %p2464_p0, %p238_p1 }
   0x5   : > { %s270_s26 = smul.u32 (!%p239_p2), 63, %s2460_s25  ;;  %v3105_v0 = vmov (!%p239_p2), 0   ;;  %v3106_v1 = vmov (!%p239_p2), 1   ;;  %v3073_v38 = vld [vmem:[%s4097_s1] sm:$0xff] (!%p239_p2)   ;;  %v3074_v42 = vld [vmem:[%s4097_s1 + $0x8] sm:$0xff] (!%p239_p2)   ;;  %v3075_v47 = vld [vmem:[%s4097_s1 + $0x10] sm:$0xff] (!%p239_p2)  }
   0x6   : > { %242 = sbr.rel (%p239_p2) target bundleno = 1175 (0x497), region = 48  ;;  %3010 = vset.pattern.permute.xlu1 (!%p239_p2), %v3105_v0  ;;  %3012 = vset.pattern.permute.xlu0 (!%p239_p2), %v3106_v1  ;;  %v3076_v50 = vld [vmem:[%s4097_s1 + $0x18] sm:$0xff] (!%p239_p2)   ;;  %v3077_v53 = vld [vmem:[%s4097_s1 + $0x20] sm:$0xff] (!%p239_p2)   ;;  %v3078_v55 = vld [vmem:[%s4097_s1 + $0x28] sm:$0xff] (!%p239_p2)  }
   0x7   : > { %p271_p3 = scmp.lt.s32.totalorder (!%p239_p2), %s270_s26, 125  ;;  %2743 = vmatprep.subr.bf16.mxu0 (!%p239_p2), %v3073_v38  ;;  %2983 = vmatprep.subr.bf16.mxu1 (!%p239_p2), %v3073_v38  ;;  %v3079_v57 = vld [vmem:[%s4097_s1 + $0x30] sm:$0xff] (!%p239_p2)   ;;  %v3080_v59 = vld [vmem:[%s4097_s1 + $0x38] sm:$0xff] (!%p239_p2)  }
   0x8   : > { %2744 = vmatpush3.bf16.msra.mxu0 (!%p239_p2), %v3073_v38  ;;  %2991 = vmatpush3.bf16.msra.mxu1 (!%p239_p2), %v3073_v38 }
   0x9   : > { %2745 = vmatprep.subr.bf16.mxu0 (!%p239_p2), %v3074_v42  ;;  %2984 = vmatprep.subr.bf16.mxu1 (!%p239_p2), %v3074_v42 }
   0xc   : > { %2746 = vmatpush3.bf16.msra.mxu0 (!%p239_p2), %v3074_v42  ;;  %2992 = vmatpush3.bf16.msra.mxu1 (!%p239_p2), %v3074_v42 }
   0xd   : > { %s4105_s26 = smov (!%p271_p3, %s270_s26), 125  ;;  %2747 = vmatprep.subr.bf16.mxu0 %v3075_v47  ;;  %2985 = vmatprep.subr.bf16.mxu1 %v3075_v47 }
   0xe   : > { %s2465_s27 = sshll.u32 %s4105_s26, 3 }
   0xf   : > { %s3166_s30 = scalar_lea.vmem %s4096_s0, %s2465_s27  ;;  %s3902_s25 = scalar_lea.vmem %s4103_s7, %s2465_s27 }
  0x10   : > { %v286_v2 = vld [vmem:[%s3166_s30 + $0x18] sm:$0xff]  ;;  %v3170_v3 = vld [vmem:[%s3166_s30 + $0x10] sm:$0xff]  ;;  %v3173_v4 = vld [vmem:[%s3166_s30] sm:$0xff]  ;;  %2748 = vmatpush3.bf16.msra.mxu0 %v3075_v47  ;;  %2993 = vmatpush3.bf16.msra.mxu1 %v3075_v47 }
  0x11   : > { %358 = vperm.xlu1 %3010, %v286_v2   ;;  %v602_v5 = vadd.s32 64, %v3170_v3  ;;  %v3177_v6 = vld [vmem:[%s3166_s30 + $0x30] sm:$0xff]  ;;  %v600_v7 = vadd.s32 64, %v3173_v4  ;;  %v3182_v9 = vld [vmem:[%s3166_s30 + $0x8] sm:$0xff]  ;;  %v603_v14 = vadd.s32 64, %v286_v2  ;;  %v287_v18 = vld [vmem:[%s3166_s30 + $0x20] sm:$0xff]  ;;  %2749 = vmatprep.subr.bf16.mxu0 %v3076_v50 }
  0x12   : > { %v606_v8 = vadd.s32 64, %v3177_v6  ;;  %v3185_v10 = vld [vmem:[%s3166_s30 + $0x50] sm:$0xff]  ;;  %v601_v11 = vadd.s32 64, %v3182_v9  ;;  %v604_v22 = vadd.s32 64, %v287_v18  ;;  %v3208_v23 = vld [vmem:[%s3166_s30 + $0x28] sm:$0xff]  ;;  %v290_v29 = vld [vmem:[%s3166_s30 + $0x38] sm:$0xff]  ;;  %2986 = vmatprep.subr.bf16.mxu1 %v3076_v50 }
  0x13   : > { %670 = vperm.xlu0 %3012, %v602_v5   ;;  %v610_v12 = vadd.s32 64, %v3185_v10  ;;  %v3191_v13 = vld [vmem:[%s3166_s30 + $0x70] sm:$0xff]  ;;  %v605_v25 = vadd.s32 64, %v3208_v23  ;;  %v607_v32 = vadd.s32 64, %v290_v29  ;;  %v291_v36 = vld [vmem:[%s3166_s30 + $0x40] sm:$0xff]  ;;  %v3248_v43 = vld [vmem:[%s3166_s30 + $0x48] sm:$0xff] }
  0x14   : > { %v3194_v15 = vld [vmem:[%s3166_s30 + $0x90] sm:$0xff]  ;;  %v614_v16 = vadd.s32 64, %v3191_v13  ;;  %v608_v40 = vadd.s32 64, %v291_v36  ;;  %v609_v45 = vadd.s32 64, %v3248_v43  ;;  %v294_v51 = vld [vmem:[%s3166_s30 + $0x58] sm:$0xff]  ;;  %2750 = vmatpush3.bf16.msra.mxu0 %v3076_v50  ;;  %2994 = vmatpush3.bf16.msra.mxu1 %v3076_v50  ;;  %v295_v56 = vld [vmem:[%s3166_s30 + $0x60] sm:$0xff] }
  0x15   : > { %3011 = vset.pattern.permute.xlu1 %v3106_v1  ;;  %v618_v17 = vadd.s32 64, %v3194_v15  ;;  %v3200_v19 = vld [vmem:[%s3166_s30 + $0xb0] sm:$0xff]  ;;  %v611_v54 = vadd.s32 64, %v294_v51  ;;  %2751 = vmatprep.subr.bf16.mxu0 %v3077_v53  ;;  %v612_v58 = vadd.s32 64, %v295_v56  ;;  %v296_v60 = vld [vmem:[%s3166_s30 + $0x68] sm:$0xff]  ;;  %v298_v62 = vld [vmem:[%s3166_s30 + $0x78] sm:$0xff] }
  0x16   : > { %664 = vperm.xlu1 %3011, %v600_v7   ;;  %v622_v20 = vadd.s32 64, %v3200_v19  ;;  %v3205_v21 = vld [vmem:[%s3166_s30 + $0xd0] sm:$0xff]  ;;  %2987 = vmatprep.subr.bf16.mxu1 %v3077_v53  ;;  %v613_v61 = vadd.s32 64, %v296_v60  ;;  %v615_v63 = vadd.s32 64, %v298_v62  ;;  %v299_v2 = vld [vmem:[%s3166_s30 + $0x80] sm:$0xff]  ;;  %v304_v7 = vld [vmem:[%s3166_s30 + $0xa8] sm:$0xff] }
  0x17   : > { %682 = vperm.xlu0 %3012, %v606_v8   ;;  %v626_v24 = vadd.s32 64, %v3205_v21  ;;  %v3214_v26 = vld [vmem:[%s3166_s30 + $0xf0] sm:$0xff] }
  0x18   : > { %v630_v27 = vadd.s32 64, %v3214_v26  ;;  %v3218_v28 = vld [vmem:[%s3166_s30 + $0x110] sm:$0xff]  ;;  %2752 = vmatpush3.bf16.msra.mxu0 %v3077_v53  ;;  %2995 = vmatpush3.bf16.msra.mxu1 %v3077_v53 }
  0x19   : > { %v634_v30 = vadd.s32 64, %v3218_v28  ;;  %v3224_v31 = vld [vmem:[%s3166_s30 + $0x130] sm:$0xff]  ;;  %2753 = vmatprep.subr.bf16.mxu0 %v3078_v55  ;;  %2988 = vmatprep.subr.bf16.mxu1 %v3078_v55 }
  0x1a   : > { %667 = vperm.xlu1 %3011, %v601_v11   ;;  %v638_v33 = vadd.s32 64, %v3224_v31  ;;  %v3228_v34 = vld [vmem:[%s3166_s30 + $0x150] sm:$0xff] }
  0x1b   : > { %694 = vperm.xlu0 %3012, %v610_v12   ;;  %v642_v35 = vadd.s32 64, %v3228_v34  ;;  %v3234_v37 = vld [vmem:[%s3166_s30 + $0x170] sm:$0xff]  ;;  %v621_v12 = vadd.s32 64, %v304_v7 }
  0x1c   : > { %v646_v39 = vadd.s32 64, %v3234_v37  ;;  %v3242_v41 = vld [vmem:[%s3166_s30 + $0x190] sm:$0xff]  ;;  %2754 = vmatpush3.bf16.msra.mxu0 %v3078_v55  ;;  %2996 = vmatpush3.bf16.msra.mxu1 %v3078_v55  ;;  %v314_v55 = vld [vmem:[%s3166_s30 + $0xf8] sm:$0xff] }
  0x1d   : > { %v650_v44 = vadd.s32 64, %v3242_v41  ;;  %v3254_v46 = vld [vmem:[%s3166_s30 + $0x1b0] sm:$0xff]  ;;  %2755 = vmatprep.subr.bf16.mxu0 %v3079_v57  ;;  %2989 = vmatprep.subr.bf16.mxu1 %v3079_v57 }
  0x1e   : > { %673 = vperm.xlu1 %3011, %v603_v14   ;;  %v654_v48 = vadd.s32 64, %v3254_v46  ;;  %v3261_v49 = vld [vmem:[%s3166_s30 + $0x1d0] sm:$0xff]  ;;  %v306_v14 = vld [vmem:[%s3166_s30 + $0xb8] sm:$0xff] }
  0x1f   : > { %706 = vperm.xlu0 %3012, %v614_v16   ;;  %v658_v52 = vadd.s32 64, %v3261_v49  ;;  %v3320_v16 = vld [vmem:[%s3166_s30 + $0x108] sm:$0xff] }
  0x20   : > { %2756 = vmatpush3.bf16.msra.mxu0 %v3079_v57  ;;  %2997 = vmatpush3.bf16.msra.mxu1 %v3079_v57  ;;  %v631_v57 = vadd.s32 64, %v314_v55 }
  0x21   : > { %2757 = vmatprep.subr.bf16.mxu0 %v3080_v59  ;;  %2990 = vmatprep.subr.bf16.mxu1 %v3080_v59 }
  0x22   : > { %3013 = vset.pattern.permute.xlu1 %v3105_v0 }
  0x23   : > { %718 = vperm.xlu0 %3012, %v618_v17   ;;  %361 = vperm.xlu1 %3013, %v287_v18   ;;  %v623_v17 = vadd.s32 64, %v306_v14 }
  0x24   : > { %2758 = vmatpush3.bf16.msra.mxu0 %v3080_v59  ;;  %2998 = vmatpush3.bf16.msra.mxu1 %v3080_v59 }
  0x27   : > { %730 = vperm.xlu0 %3012, %v622_v20   ;;  %3014 = vset.pattern.permute.xlu1 %v3106_v1 }
  0x28   : > { %676 = vperm.xlu1 %3014, %v604_v22  }
  0x2b   : > { %742 = vperm.xlu0 %3012, %v626_v24  }
  0x2c   : > { %679 = vperm.xlu1 %3014, %v605_v25  }
  0x2f   : > { %754 = vperm.xlu0 %3012, %v630_v27  }
  0x30   : > { %3015 = vset.pattern.permute.xlu1 %v3105_v0 }
  0x31   : > { %370 = vperm.xlu1 %3015, %v290_v29   ;;  %v3348_v29 = vld [vmem:[%s3166_s30 + $0x148] sm:$0xff] }
  0x33   : > { %766 = vperm.xlu0 %3012, %v634_v30  }
  0x35   : > { %3016 = vset.pattern.permute.xlu1 %v3106_v1 }
  0x36   : > { %685 = vperm.xlu1 %3016, %v607_v32  }
  0x37   : > { %778 = vperm.xlu0 %3012, %v638_v33  }
  0x3a   : > { %3017 = vset.pattern.permute.xlu1 %v3105_v0 }
  0x3b   : > { %790 = vperm.xlu0 %3012, %v642_v35   ;;  %373 = vperm.xlu1 %3017, %v291_v36   ;;  %v310_v35 = vld [vmem:[%s3166_s30 + $0xd8] sm:$0xff] }
  0x3c   : > { %v627_v38 = vadd.s32 64, %v310_v35 }
  0x3f   : > { %802 = vperm.xlu0 %3012, %v646_v39   ;;  %3018 = vset.pattern.permute.xlu1 %v3106_v1 }
  0x40   : > { %688 = vperm.xlu1 %3018, %v608_v40  }
  0x43   : > { %814 = vperm.xlu0 %3012, %v650_v44   ;;  %v3378_v44 = vld [vmem:[%s3166_s30 + $0x188] sm:$0xff] }
  0x44   : > { %691 = vperm.xlu1 %3018, %v609_v45  }
  0x47   : > { %826 = vperm.xlu0 %3012, %v654_v48  }
  0x48   : > { %3019 = vset.pattern.permute.xlu1 %v3105_v0 }
  0x49   : > { %382 = vperm.xlu1 %3019, %v294_v51   ;;  %v3391_v51 = vld [vmem:[%s3166_s30 + $0x1a8] sm:$0xff] }
  0x4b   : > { %838 = vperm.xlu0 %3012, %v658_v52  }
  0x4d   : > { %3020 = vset.pattern.permute.xlu1 %v3106_v1 }
  0x4e   : > { %697 = vperm.xlu1 %3020, %v611_v54  }
  0x4f   : > { %3068 = vset.pattern.permute.xlu0 %v3105_v0 }
  0x50   : > { %349 = vperm.xlu0 %3068, %v3173_v4   ;;  %v300_v4 = vld [vmem:[%s3166_s30 + $0x88] sm:$0xff] }
  0x51   : > { %v617_v5 = vadd.s32 64, %v300_v4 }
  0x52   : > { %3021 = vset.pattern.permute.xlu1 %v3105_v0 }
  0x53   : > { %385 = vperm.xlu1 %3021, %v295_v56  }
  0x54   : > { %352 = vperm.xlu0 %3068, %v3182_v9   ;;  %v303_v9 = vld [vmem:[%s3166_s30 + $0xa0] sm:$0xff] }
  0x55   : > { %v620_v11 = vadd.s32 64, %v303_v9 }
  0x57   : > { %3022 = vset.pattern.permute.xlu1 %v3106_v1 }
  0x58   : > { %355 = vperm.xlu0 %3068, %v3170_v3   ;;  %700 = vperm.xlu1 %3022, %v612_v58   ;;  %v616_v3 = vadd.s32 64, %v299_v2 }
  0x5c   : > { %364 = vperm.xlu0 %3068, %v3208_v23   ;;  %703 = vperm.xlu1 %3022, %v613_v61   ;;  %v3335_v23 = vld [vmem:[%s3166_s30 + $0x128] sm:$0xff]  ;;  %v315_v61 = vld [vmem:[%s3166_s30 + $0x100] sm:$0xff] }
  0x60   : > { %367 = vperm.xlu0 %3068, %v3177_v6   ;;  %3023 = vset.pattern.permute.xlu1 %v3105_v0  ;;  %v302_v6 = vld [vmem:[%s3166_s30 + $0x98] sm:$0xff] }
  0x61   : > { %394 = vperm.xlu1 %3023, %v298_v62   ;;  %v619_v8 = vadd.s32 64, %v302_v6  ;;  %v3421_v62 = vld [vmem:[%s3166_s30 + $0x1e8] sm:$0xff] }
  0x64   : > { %376 = vperm.xlu0 %3068, %v3248_v43   ;;  %v311_v43 = vld [vmem:[%s3166_s30 + $0xe0] sm:$0xff] }
  0x65   : > { %3024 = vset.pattern.permute.xlu1 %v3106_v1  ;;  %v628_v47 = vadd.s32 64, %v311_v43 }
  0x66   : > { %709 = vperm.xlu1 %3024, %v615_v63  }
  0x68   : > { %379 = vperm.xlu0 %3068, %v3185_v10   ;;  %v308_v10 = vld [vmem:[%s3166_s30 + $0xc8] sm:$0xff] }
  0x6a   : > { %3025 = vset.pattern.permute.xlu1 %v3105_v0 }
  0x6b   : > { %397 = vperm.xlu1 %3025, %v299_v2   ;;  %v346_v2 = vlaneseq }
  0x6c   : > { %388 = vperm.xlu0 %3068, %v296_v60  }
  0x6f   : > { %3026 = vset.pattern.permute.xlu1 %v3106_v1 }
  0x70   : > { %391 = vperm.xlu0 %3068, %v3191_v13   ;;  %712 = vperm.xlu1 %3026, %v616_v3   ;;  %v312_v13 = vld [vmem:[%s3166_s30 + $0xe8] sm:$0xff]  ;;  %v632_v3 = vadd.s32 64, %v315_v61 }
  0x74   : > { %400 = vperm.xlu0 %3068, %v300_v4   ;;  %715 = vperm.xlu1 %3026, %v617_v5   ;;  %v3430_v5 = vld [vmem:[%s3166_s30 + $0x1f0] sm:$0xff] }
  0x78   : > { %403 = vperm.xlu0 %3068, %v3194_v15   ;;  %3027 = vset.pattern.permute.xlu1 %v3105_v0 }
  0x79   : > { %406 = vperm.xlu1 %3027, %v302_v6   ;;  %v3432_v6 = vand.u32 127, %v346_v2 }
  0x7c   : > { %412 = vperm.xlu0 %3068, %v304_v7   ;;  %v633_v7 = vadd.s32 64, %v3320_v16 }
  0x7d   : > { %3028 = vset.pattern.permute.xlu1 %v3106_v1 }
  0x7e   : > { %721 = vperm.xlu1 %3028, %v619_v8  }
  0x80   : > { %415 = vperm.xlu0 %3068, %v3200_v19  }
  0x82   : > { %3029 = vset.pattern.permute.xlu1 %v3105_v0 }
  0x83   : > { %409 = vperm.xlu1 %3029, %v303_v9  }
  0x84   : > { %424 = vperm.xlu0 %3068, %v308_v10  }
  0x87   : > { %3030 = vset.pattern.permute.xlu1 %v3106_v1 }
  0x88   : > { %427 = vperm.xlu0 %3068, %v3205_v21   ;;  %724 = vperm.xlu1 %3030, %v620_v11   ;;  %v307_v21 = vld [vmem:[%s3166_s30 + $0xc0] sm:$0xff] }
  0x89   : > { %v624_v25 = vadd.s32 64, %v307_v21 }
  0x8c   : > { %436 = vperm.xlu0 %3068, %v312_v13   ;;  %727 = vperm.xlu1 %3030, %v621_v12   ;;  %v3107_v12 = vmov 1.0|1.0  }
  0x90   : > { %v3315_v15 = vpop.permute.xlu1 %358  ;;  %439 = vperm.xlu0 %3068, %v3214_v26   ;;  %3031 = vset.pattern.permute.xlu1 %v3105_v0 }
  0x91   : > { %418 = vperm.xlu1 %3031, %v306_v14   ;;  %vm540_vm9 = vcmp.eq.s32.totalorder %v3432_v6, %v3315_v15 }
  0x92   : > { %v3322_v18 = vpop.permute.xlu0 %670 }
  0x93   : > { %vm854_vm7 = vcmp.eq.s32.totalorder %v3432_v6, %v3322_v18 }
  0x94   : > { %448 = vperm.xlu0 %3068, %v3320_v16  }
  0x95   : > { %3032 = vset.pattern.permute.xlu1 %v3106_v1  ;;  %v3326_v19 = vpop.permute.xlu1 %664 }
  0x96   : > { %733 = vperm.xlu1 %3032, %v623_v17   ;;  %v3328_v20 = vpop.permute.xlu0 %682  ;;  %vm852_vm1 = vcmp.eq.s32.totalorder %v3432_v6, %v3326_v19  ;;  %v319_v19 = vld [vmem:[%s3166_s30 + $0x120] sm:$0xff] }
  0x98   : > { %451 = vperm.xlu0 %3068, %v3218_v28   ;;  %v625_v28 = vadd.s32 64, %v308_v10  ;;  %v318_v10 = vld [vmem:[%s3166_s30 + $0x118] sm:$0xff] }
  0x99   : > { %v3332_v22 = vpop.permute.xlu1 %667  ;;  %v635_v14 = vadd.s32 64, %v318_v10 }
  0x9a   : > { %3033 = vset.pattern.permute.xlu1 %v3105_v0  ;;  %v3338_v24 = vpop.permute.xlu0 %694  ;;  %vm853_vm2 = vcmp.eq.s32.totalorder %v3432_v6, %v3332_v22 }
  0x9b   : > { %421 = vperm.xlu1 %3033, %v307_v21   ;;  %v636_v21 = vadd.s32 64, %v319_v19 }
  0x9c   : > { %460 = vperm.xlu0 %3068, %v3335_v23  }
  0x9d   : > { %v3341_v26 = vpop.permute.xlu1 %673 }
  0x9e   : > { %v3343_v27 = vpop.permute.xlu0 %706  ;;  %vm855_vm5 = vcmp.eq.s32.totalorder %v3432_v6, %v3341_v26  ;;  %v637_v26 = vadd.s32 64, %v3335_v23  ;;  %v322_v23 = vld [vmem:[%s3166_s30 + $0x138] sm:$0xff] }
  0x9f   : > { %3034 = vset.pattern.permute.xlu1 %v3106_v1  ;;  %vm918_vm10 = vmor %vm540_vm9, %vm855_vm5  ;;  %vm858_vm5 = vcmp.eq.s32.totalorder %v3432_v6, %v3328_v20 }
  0xa0   : > { %463 = vperm.xlu0 %3068, %v3224_v31   ;;  %736 = vperm.xlu1 %3034, %v624_v25   ;;  %v3363_v31 = vld [vmem:[%s3166_s30 + $0x168] sm:$0xff] }
  0xa2   : > { %v3350_v30 = vpop.permute.xlu1 %361  ;;  %v3352_v32 = vpop.permute.xlu0 %718 }
  0xa3   : > { %vm541_vm15 = vcmp.eq.s32.totalorder %v3432_v6, %v3350_v30 }
  0xa4   : > { %472 = vperm.xlu0 %3068, %v3348_v29   ;;  %739 = vperm.xlu1 %3034, %v625_v28  }
  0xa6   : > { %v3355_v33 = vpop.permute.xlu0 %730 }
  0xa7   : > { %v3358_v36 = vpop.permute.xlu1 %676 }
  0xa8   : > { %475 = vperm.xlu0 %3068, %v3228_v34   ;;  %3035 = vset.pattern.permute.xlu1 %v3105_v0  ;;  %vm856_vm12 = vcmp.eq.s32.totalorder %v3432_v6, %v3358_v36 }
  0xa9   : > { %430 = vperm.xlu1 %3035, %v310_v35  }
  0xaa   : > { %v3365_v39 = vpop.permute.xlu0 %742 }
  0xab   : > { %v3367_v40 = vpop.permute.xlu1 %679 }
  0xac   : > { %484 = vperm.xlu0 %3068, %v3363_v31  }
  0xad   : > { %3036 = vset.pattern.permute.xlu1 %v3106_v1 }
  0xae   : > { %745 = vperm.xlu1 %3036, %v627_v38   ;;  %v3371_v42 = vpop.permute.xlu0 %754 }
  0xb0   : > { %487 = vperm.xlu0 %3068, %v3234_v37   ;;  %v3374_v34 = vpop.permute.xlu1 %370  ;;  %v629_v37 = vadd.s32 64, %v312_v13 }
  0xb2   : > { %3037 = vset.pattern.permute.xlu1 %v3105_v0  ;;  %v3381_v45 = vpop.permute.xlu0 %766 }
  0xb3   : > { %433 = vperm.xlu1 %3037, %v311_v43  }
  0xb4   : > { %496 = vperm.xlu0 %3068, %v3378_v44  }
  0xb5   : > { %v3384_v48 = vpop.permute.xlu1 %685 }
  0xb6   : > { %v3386_v50 = vpop.permute.xlu0 %778 }
  0xb7   : > { %3038 = vset.pattern.permute.xlu1 %v3106_v1 }
  0xb8   : > { %499 = vperm.xlu0 %3068, %v3242_v41   ;;  %748 = vperm.xlu1 %3038, %v628_v47   ;;  %v3406_v41 = vld [vmem:[%s3166_s30 + $0x1c8] sm:$0xff] }
  0xba   : > { %v3393_v52 = vpop.permute.xlu1 %373  ;;  %v3395_v53 = vpop.permute.xlu0 %790 }
  0xbc   : > { %508 = vperm.xlu0 %3068, %v3391_v51   ;;  %751 = vperm.xlu1 %3038, %v629_v37   ;;  %v641_v37 = vadd.s32 64, %v3348_v29 }
  0xbe   : > { %v3398_v54 = vpop.permute.xlu0 %802 }
  0xbf   : > { %v3401_v56 = vpop.permute.xlu1 %688 }
  0xc0   : > { %511 = vperm.xlu0 %3068, %v3254_v46   ;;  %3039 = vset.pattern.permute.xlu1 %v3105_v0 }
  0xc1   : > { %442 = vperm.xlu1 %3039, %v314_v55  }
  0xc2   : > { %v3408_v58 = vpop.permute.xlu0 %814 }
  0xc3   : > { %v3410_v59 = vpop.permute.xlu1 %691 }
  0xc4   : > { %520 = vperm.xlu0 %3068, %v3406_v41  }
  0xc5   : > { %3040 = vset.pattern.permute.xlu1 %v3106_v1 }
  0xc6   : > { %757 = vperm.xlu1 %3040, %v631_v57   ;;  %v3414_v60 = vpop.permute.xlu0 %826 }
  0xc8   : > { %523 = vperm.xlu0 %3068, %v3261_v49   ;;  %v3417_v46 = vpop.permute.xlu1 %382 }
  0xca   : > { %3041 = vset.pattern.permute.xlu1 %v3105_v0  ;;  %v3424_v63 = vpop.permute.xlu0 %838 }
  0xcb   : > { %445 = vperm.xlu1 %3041, %v315_v61  }
  0xcc   : > { %532 = vperm.xlu0 %3068, %v3421_v62  }
  0xcd   : > { %v3427_v4 = vpop.permute.xlu1 %697 }
  0xcf   : > { %v350_v49 = vpop.permute.xlu0 %349  ;;  %3042 = vset.pattern.permute.xlu1 %v3106_v1 }
  0xd0   : > { %760 = vperm.xlu1 %3042, %v632_v3   ;;  %535 = vperm.xlu0 %3068, %v3430_v5   ;;  %vm537_vm0 = vcmp.eq.s32.totalorder %v3432_v6, %v350_v49  ;;  %v330_v49 = vld [vmem:[%s3166_s30 + $0x178] sm:$0xff] }
  0xd1   : > { %vm915_vm4 = vmor %vm537_vm0, %vm852_vm1  ;;  %vm857_vm1 = vcmp.eq.s32.totalorder %v3432_v6, %v3367_v40 }
  0xd2   : > { %v3438_v8 = vpop.permute.xlu1 %385  ;;  %vm919_vm0 = vmor %vm541_vm15, %vm856_vm12  ;;  %vm861_vm15 = vcmp.eq.s32.totalorder %v3432_v6, %v3410_v59 }
  0xd3   : > { %v353_v9 = vpop.permute.xlu0 %352 }
  0xd4   : > { %vm538_vm3 = vcmp.eq.s32.totalorder %v3432_v6, %v353_v9  ;;  %763 = vperm.xlu1 %3042, %v633_v7   ;;  %3072 = vset.pattern.permute.xlu0 %v3106_v1  ;;  %v647_v9 = vadd.s32 64, %v330_v49 }
  0xd5   : > { %vm916_vm6 = vmor %vm538_vm3, %vm853_vm2  ;;  %vm859_vm3 = vcmp.eq.s32.totalorder %v3432_v6, %v3384_v48 }
  0xd6   : > { %vm2539_vm8 = vmpackc.low %vm916_vm6, %vm915_vm4 }
  0xd7   : > { %v356_v11 = vpop.permute.xlu0 %355  ;;  %2759 = vmatprep.mubr.msk.bf16.mxu0 %vm2539_vm8, %v3107_v12  ;;  %v701_v13 = vpop.permute.xlu1 %700 }
  0xd8   : > { %vm539_vm11 = vcmp.eq.s32.totalorder %v3432_v6, %v356_v11  ;;  %3043 = vset.pattern.permute.xlu1 %v3105_v0  ;;  %v331_v11 = vld [vmem:[%s3166_s30 + $0x180] sm:$0xff] }
  0xd9   : > { %vm917_vm13 = vmor %vm539_vm11, %vm854_vm7  ;;  %454 = vperm.xlu1 %3043, %v318_v10   ;;  %vm544_vm7 = vcmp.eq.s32.totalorder %v3432_v6, %v3374_v34  ;;  %v323_v34 = vld [vmem:[%s3166_s30 + $0x140] sm:$0xff] }
  0xda   : > { %vm2541_vm14 = vmpackc.low %vm918_vm10, %vm917_vm13  ;;  %vm860_vm10 = vcmp.eq.s32.totalorder %v3432_v6, %v3401_v56  ;;  %vm545_vm13 = vcmp.eq.s32.totalorder %v3432_v6, %v3393_v52  ;;  %v640_v47 = vadd.s32 64, %v323_v34  ;;  %v326_v52 = vld [vmem:[%s3166_s30 + $0x158] sm:$0xff] }
  0xdb   : > { %v365_v15 = vpop.permute.xlu0 %364  ;;  %2760 = vmatmul.mubr.msk.bf16.vlgmr.msra.gmra.mrb[0].mxu0 %vm2541_vm14, %v3107_v12  ;;  %v704_v16 = vpop.permute.xlu1 %703  ;;  %vm922_vm8 = vmor %vm544_vm7, %vm859_vm3  ;;  %vm862_vm3 = vcmp.eq.s32.totalorder %v3432_v6, %v3338_v24  ;;  %v643_v57 = vadd.s32 64, %v326_v52 }
  0xdc   : > { %vm542_vm2 = vcmp.eq.s32.totalorder %v3432_v6, %v365_v15  ;;  %vm923_vm14 = vmor %vm545_vm13, %vm860_vm10  ;;  %vm865_vm13 = vcmp.eq.s32.totalorder %v3432_v6, %v704_v16  ;;  %v649_v16 = vadd.s32 64, %v3378_v44 }
  0xdd   : > { %vm920_vm4 = vmor %vm542_vm2, %vm857_vm1  ;;  %3044 = vset.pattern.permute.xlu1 %v3106_v1  ;;  %vm863_vm1 = vcmp.eq.s32.totalorder %v3432_v6, %v3427_v4  ;;  %v645_v4 = vadd.s32 64, %v3363_v31 }
  0xde   : > { %vm2543_vm6 = vmpackc.low %vm920_vm4, %vm919_vm0  ;;  %769 = vperm.xlu1 %3044, %v635_v14   ;;  %v648_v14 = vadd.s32 64, %v331_v11 }
  0xdf   : > { %v368_v17 = vpop.permute.xlu0 %367  ;;  %2763 = vmatprep.mubr.msk.bf16.mxu0 %vm2543_vm6, %v3107_v12 }
  0xe0   : > { %vm543_vm9 = vcmp.eq.s32.totalorder %v3432_v6, %v368_v17  ;;  %v395_v18 = vpop.permute.xlu1 %394  ;;  %v334_v17 = vld [vmem:[%s3166_s30 + $0x198] sm:$0xff] }
  0xe1   : > { %vm921_vm11 = vmor %vm543_vm9, %vm858_vm5  ;;  %vm548_vm5 = vcmp.eq.s32.totalorder %v3432_v6, %v3417_v46  ;;  %v327_v46 = vld [vmem:[%s3166_s30 + $0x160] sm:$0xff] }
  0xe2   : > { %vm2545_vm12 = vmpackc.low %vm922_vm8, %vm921_vm11  ;;  %3045 = vset.pattern.permute.xlu1 %v3105_v0  ;;  %vm864_vm8 = vcmp.eq.s32.totalorder %v3432_v6, %v701_v13  ;;  %vm549_vm11 = vcmp.eq.s32.totalorder %v3432_v6, %v3438_v8  ;;  %v644_v2 = vadd.s32 64, %v327_v46 }
  0xe3   : > { %v377_v20 = vpop.permute.xlu0 %376  ;;  %457 = vperm.xlu1 %3045, %v319_v19   ;;  %2764 = vmatmul.mubr.msk.bf16.gmra.mrb[4].mxu0 %vm2545_vm12, %v3107_v12  ;;  %vm926_vm6 = vmor %vm548_vm5, %vm863_vm1  ;;  %vm866_vm1 = vcmp.eq.s32.totalorder %v3432_v6, %v3343_v27  ;;  %v639_v27 = vadd.s32 64, %v322_v23 }
  0xe4   : > { %vm546_vm0 = vcmp.eq.s32.totalorder %v3432_v6, %v377_v20  ;;  %vm927_vm12 = vmor %vm549_vm11, %vm864_vm8  ;;  %v651_v20 = vadd.s32 64, %v334_v17 }
  0xe5   : > { %vm924_vm2 = vmor %vm546_vm0, %vm861_vm15  ;;  %v710_v22 = vpop.permute.xlu1 %709 }
  0xe6   : > { %vm2547_vm4 = vmpackc.low %vm924_vm2, %vm923_vm14  ;;  %vm867_vm15 = vcmp.eq.s32.totalorder %v3432_v6, %v710_v22  ;;  %v335_v22 = vld [vmem:[%s3166_s30 + $0x1a0] sm:$0xff] }
  0xe7   : > { %v380_v25 = vpop.permute.xlu0 %379  ;;  %3046 = vset.pattern.permute.xlu1 %v3106_v1  ;;  %2767 = vmatprep.mubr.msk.bf16.mxu0 %vm2547_vm4, %v3107_v12 }
  0xe8   : > { %vm547_vm7 = vcmp.eq.s32.totalorder %v3432_v6, %v380_v25  ;;  %772 = vperm.xlu1 %3046, %v636_v21  }
  0xe9   : > { %vm925_vm9 = vmor %vm547_vm7, %vm862_vm3  ;;  %vm552_vm3 = vcmp.eq.s32.totalorder %v3432_v6, %v395_v18 }
  0xea   : > { %vm2549_vm10 = vmpackc.low %vm926_vm6, %vm925_vm9  ;;  %v398_v24 = vpop.permute.xlu1 %397 }
  0xeb   : > { %v389_v28 = vpop.permute.xlu0 %388  ;;  %2768 = vmatmul.mubr.msk.bf16.gmra.mrb[8].mxu0 %vm2549_vm10, %v3107_v12  ;;  %vm930_vm4 = vmor %vm552_vm3, %vm867_vm15  ;;  %vm553_vm9 = vcmp.eq.s32.totalorder %v3432_v6, %v398_v24  ;;  %vm870_vm15 = vcmp.eq.s32.totalorder %v3432_v6, %v3352_v32 }
  0xec   : > { %vm550_vm14 = vcmp.eq.s32.totalorder %v3432_v6, %v389_v28  ;;  %775 = vperm.xlu1 %3046, %v637_v26   ;;  %v652_v26 = vadd.s32 64, %v335_v22  ;;  %v653_v28 = vadd.s32 64, %v3391_v51 }
  0xed   : > { %vm928_vm0 = vmor %vm550_vm14, %vm865_vm13 }
  0xee   : > { %vm2551_vm2 = vmpackc.low %vm928_vm0, %vm927_vm12 }
  0xef   : > { %v392_v30 = vpop.permute.xlu0 %391  ;;  %2771 = vmatprep.mubr.msk.bf16.mxu0 %vm2551_vm2, %v3107_v12  ;;  %v713_v35 = vpop.permute.xlu1 %712 }
  0xf0   : > { %vm551_vm5 = vcmp.eq.s32.totalorder %v3432_v6, %v392_v30  ;;  %3047 = vset.pattern.permute.xlu1 %v3105_v0  ;;  %vm868_vm7 = vcmp.eq.s32.totalorder %v3432_v6, %v713_v35 }
  0xf1   : > { %vm929_vm6 = vmor %vm551_vm5, %vm866_vm1  ;;  %466 = vperm.xlu1 %3047, %v322_v23   ;;  %v338_v23 = vld [vmem:[%s3166_s30 + $0x1b8] sm:$0xff] }
  0xf2   : > { %vm2553_vm8 = vmpackc.low %vm930_vm4, %vm929_vm6 }
  0xf3   : > { %v401_v36 = vpop.permute.xlu0 %400  ;;  %2772 = vmatmul.mubr.msk.bf16.gmra.mrb[12].mxu0 %vm2553_vm8, %v3107_v12  ;;  %v716_v38 = vpop.permute.xlu1 %715  ;;  %vm931_vm10 = vmor %vm553_vm9, %vm868_vm7 }
  0xf4   : > { %vm554_vm11 = vcmp.eq.s32.totalorder %v3432_v6, %v401_v36  ;;  %vm869_vm12 = vcmp.eq.s32.totalorder %v3432_v6, %v716_v38  ;;  %v339_v38 = vld [vmem:[%s3166_s30 + $0x1c0] sm:$0xff] }
  0xf5   : > { %vm932_vm13 = vmor %vm554_vm11, %vm869_vm12  ;;  %3048 = vset.pattern.permute.xlu1 %v3106_v1 }
  0xf6   : > { %781 = vperm.xlu1 %3048, %v639_v27   ;;  %vm2555_vm14 = vmpackc.low %vm932_vm13, %vm931_vm10  ;;  %vm874_vm13 = vcmp.eq.s32.totalorder %v3432_v6, %v3355_v33  ;;  %v655_v27 = vadd.s32 64, %v338_v23 }
  0xf7   : > { %2775 = vmatprep.mubr.msk.bf16.mxu0 %vm2555_vm14, %v3107_v12  ;;  %v404_v43 = vpop.permute.xlu0 %403 }
  0xf8   : > { %v407_v40 = vpop.permute.xlu1 %406  ;;  %vm555_vm0 = vcmp.eq.s32.totalorder %v3432_v6, %v404_v43 }
  0xf9   : > { %vm933_vm1 = vmor %vm555_vm0, %vm870_vm15  ;;  %vm556_vm2 = vcmp.eq.s32.totalorder %v3432_v6, %v407_v40 }
  0xfa   : > { %3049 = vset.pattern.permute.xlu1 %v3105_v0 }
  0xfb   : > { %469 = vperm.xlu1 %3049, %v323_v34   ;;  %v413_v56 = vpop.permute.xlu0 %412  ;;  %v656_v34 = vadd.s32 64, %v339_v38 }
  0xfc   : > { %vm558_vm7 = vcmp.eq.s32.totalorder %v3432_v6, %v413_v56  ;;  %v3082_v56 = vld [vmem:[%s4099_s3 + $0x8] sm:$0xff]  }
  0xfd   : > { %v722_v48 = vpop.permute.xlu1 %721 }
  0xfe   : > { %vm871_vm3 = vcmp.eq.s32.totalorder %v3432_v6, %v722_v48  ;;  %v342_v48 = vld [vmem:[%s3166_s30 + $0x1d8] sm:$0xff] }
  0xff   : > { %vm934_vm4 = vmor %vm556_vm2, %vm871_vm3  ;;  %3050 = vset.pattern.permute.xlu1 %v3106_v1  ;;  %v416_v61 = vpop.permute.xlu0 %415 }
 0x100   : > { %784 = vperm.xlu1 %3050, %v640_v47   ;;  %vm2557_vm5 = vmpackc.low %vm934_vm4, %vm933_vm1  ;;  %vm559_vm14 = vcmp.eq.s32.totalorder %v3432_v6, %v416_v61  ;;  %v657_v47 = vadd.s32 64, %v3406_v41  ;;  %v659_v41 = vadd.s32 64, %v342_v48 }
 0x101   : > { %2776 = vmatmul.mubr.msk.bf16.gmra.mrb[16].mxu0 %vm2557_vm5, %v3107_v12  ;;  %vm937_vm15 = vmor %vm559_vm14, %vm874_vm13 }
 0x102   : > { %v410_v32 = vpop.permute.xlu1 %409 }
 0x103   : > { %vm557_vm8 = vcmp.eq.s32.totalorder %v3432_v6, %v410_v32  ;;  %v425_v8 = vpop.permute.xlu0 %424 }
 0x104   : > { %787 = vperm.xlu1 %3050, %v641_v37   ;;  %vm562_vm5 = vcmp.eq.s32.totalorder %v3432_v6, %v425_v8  ;;  %v3088_v8 = vld [vmem:[%s4099_s3 + $0x38] sm:$0xff]  }
 0x107   : > { %v725_v55 = vpop.permute.xlu1 %724  ;;  %v428_v13 = vpop.permute.xlu0 %427 }
 0x108   : > { %3051 = vset.pattern.permute.xlu1 %v3105_v0  ;;  %vm872_vm6 = vcmp.eq.s32.totalorder %v3432_v6, %v725_v55 }
 0x109   : > { %478 = vperm.xlu1 %3051, %v326_v52   ;;  %vm935_vm9 = vmor %vm557_vm8, %vm872_vm6  ;;  %v3081_v52 = vld [vmem:[%s4099_s3] sm:$0xff]  }
 0x10a   : > { %2823 = vmatprep.subr.bf16.mxu1 %v3081_v52 }
 0x10b   : > { %v728_v29 = vpop.permute.xlu1 %727  ;;  %v437_v19 = vpop.permute.xlu0 %436 }
 0x10c   : > { %vm873_vm10 = vcmp.eq.s32.totalorder %v3432_v6, %v728_v29  ;;  %v343_v29 = vld [vmem:[%s3166_s30 + $0x1e0] sm:$0xff] }
 0x10d   : > { %vm936_vm11 = vmor %vm558_vm7, %vm873_vm10  ;;  %3052 = vset.pattern.permute.xlu1 %v3106_v1  ;;  %v660_v61 = vadd.s32 64, %v343_v29 }
 0x10e   : > { %793 = vperm.xlu1 %3052, %v643_v57   ;;  %vm2559_vm12 = vmpackc.low %vm936_vm11, %vm935_vm9  ;;  %vm878_vm11 = vcmp.eq.s32.totalorder %v3432_v6, %v3365_v39 }
 0x10f   : > { %2779 = vmatprep.mubr.msk.bf16.mxu0 %vm2559_vm12, %v3107_v12  ;;  %vm563_vm12 = vcmp.eq.s32.totalorder %v3432_v6, %v428_v13  ;;  %v440_v25 = vpop.permute.xlu0 %439 }
 0x110   : > { %v419_v59 = vpop.permute.xlu1 %418  ;;  %vm941_vm13 = vmor %vm563_vm12, %vm878_vm11 }
 0x111   : > { %vm560_vm0 = vcmp.eq.s32.totalorder %v3432_v6, %v419_v59 }
 0x112   : > { %3053 = vset.pattern.permute.xlu1 %v3105_v0 }
 0x113   : > { %481 = vperm.xlu1 %3053, %v327_v46   ;;  %v449_v35 = vpop.permute.xlu0 %448  ;;  %v3083_v46 = vld [vmem:[%s4099_s3 + $0x10] sm:$0xff]  }
 0x115   : > { %v734_v3 = vpop.permute.xlu1 %733 }
 0x116   : > { %vm875_vm1 = vcmp.eq.s32.totalorder %v3432_v6, %v734_v3 }
 0x117   : > { %vm938_vm2 = vmor %vm560_vm0, %vm875_vm1  ;;  %3054 = vset.pattern.permute.xlu1 %v3106_v1  ;;  %v452_v40 = vpop.permute.xlu0 %451 }
 0x118   : > { %796 = vperm.xlu1 %3054, %v644_v2   ;;  %vm2561_vm3 = vmpackc.low %vm938_vm2, %vm937_vm15  ;;  %v3084_v2 = vld [vmem:[%s4099_s3 + $0x18] sm:$0xff]  }
 0x119   : > { %2780 = vmatmul.mubr.msk.bf16.gmra.mrb[20].mxu0 %vm2561_vm3, %v3107_v12  ;;  %vm566_vm3 = vcmp.eq.s32.totalorder %v3432_v6, %v437_v19 }
 0x11a   : > { %v422_v33 = vpop.permute.xlu1 %421 }
 0x11b   : > { %vm561_vm6 = vcmp.eq.s32.totalorder %v3432_v6, %v422_v33  ;;  %v461_v32 = vpop.permute.xlu0 %460  ;;  %v662_v33 = vadd.s32 64, %v3430_v5  ;;  %v3087_v5 = vld [vmem:[%s4099_s3 + $0x30] sm:$0xff]  }
 0x11c   : > { %799 = vperm.xlu1 %3054, %v645_v4  }
 0x11f   : > { %v737_v7 = vpop.permute.xlu1 %736  ;;  %v464_v59 = vpop.permute.xlu0 %463 }
 0x120   : > { %3055 = vset.pattern.permute.xlu1 %v3105_v0  ;;  %vm876_vm4 = vcmp.eq.s32.totalorder %v3432_v6, %v737_v7 }
 0x121   : > { %490 = vperm.xlu1 %3055, %v330_v49   ;;  %vm939_vm7 = vmor %vm561_vm6, %vm876_vm4 }
 0x123   : > { %v740_v31 = vpop.permute.xlu1 %739 }
 0x124   : > { %vm877_vm8 = vcmp.eq.s32.totalorder %v3432_v6, %v740_v31 }
 0x125   : > { %vm940_vm9 = vmor %vm562_vm5, %vm877_vm8  ;;  %3056 = vset.pattern.permute.xlu1 %v3106_v1 }
 0x126   : > { %vm2563_vm10 = vmpackc.low %vm940_vm9, %vm939_vm7  ;;  %805 = vperm.xlu1 %3056, %v647_v9   ;;  %vm882_vm9 = vcmp.eq.s32.totalorder %v3432_v6, %v3371_v42 }
 0x127   : > { %2783 = vmatprep.mubr.msk.bf16.mxu0 %vm2563_vm10, %v3107_v12  ;;  %vm567_vm10 = vcmp.eq.s32.totalorder %v3432_v6, %v440_v25 }
 0x128   : > { %v431_v10 = vpop.permute.xlu1 %430  ;;  %vm945_vm11 = vmor %vm567_vm10, %vm882_vm9 }
 0x129   : > { %vm564_vm14 = vcmp.eq.s32.totalorder %v3432_v6, %v431_v10 }
 0x12a   : > { %3057 = vset.pattern.permute.xlu1 %v3105_v0 }
 0x12b   : > { %493 = vperm.xlu1 %3057, %v331_v11  }
 0x12d   : > { %v746_v15 = vpop.permute.xlu1 %745 }
 0x12e   : > { %vm879_vm15 = vcmp.eq.s32.totalorder %v3432_v6, %v746_v15 }
 0x12f   : > { %vm942_vm0 = vmor %vm564_vm14, %vm879_vm15  ;;  %3058 = vset.pattern.permute.xlu1 %v3106_v1 }
 0x130   : > { %vm2565_vm1 = vmpackc.low %vm942_vm0, %vm941_vm13  ;;  %808 = vperm.xlu1 %3058, %v648_v14  }
 0x131   : > { %2784 = vmatmul.mubr.msk.bf16.gmra.mrb[24].mxu0 %vm2565_vm1, %v3107_v12  ;;  %vm570_vm1 = vcmp.eq.s32.totalorder %v3432_v6, %v449_v35 }
 0x132   : > { %v434_v39 = vpop.permute.xlu1 %433 }
 0x133   : > { %vm565_vm4 = vcmp.eq.s32.totalorder %v3432_v6, %v434_v39 }
 0x134   : > { %811 = vperm.xlu1 %3058, %v649_v16  }
 0x137   : > { %v749_v18 = vpop.permute.xlu1 %748 }
 0x138   : > { %3059 = vset.pattern.permute.xlu1 %v3105_v0  ;;  %vm880_vm2 = vcmp.eq.s32.totalorder %v3432_v6, %v749_v18  ;;  %v3664_v18 = vld [vmem:[%s4098_s2] ss:$0 sm:$0xff] }
 0x139   : > { %502 = vperm.xlu1 %3059, %v334_v17   ;;  %vm943_vm5 = vmor %vm565_vm4, %vm880_vm2 }
 0x13b   : > { %v752_v44 = vpop.permute.xlu1 %751 }
 0x13c   : > { %vm881_vm6 = vcmp.eq.s32.totalorder %v3432_v6, %v752_v44 }
 0x13d   : > { %vm944_vm7 = vmor %vm566_vm3, %vm881_vm6  ;;  %3060 = vset.pattern.permute.xlu1 %v3106_v1 }
 0x13e   : > { %vm2567_vm8 = vmpackc.low %vm944_vm7, %vm943_vm5  ;;  %817 = vperm.xlu1 %3060, %v651_v20   ;;  %vm886_vm7 = vcmp.eq.s32.totalorder %v3432_v6, %v3381_v45 }
 0x13f   : > { %2787 = vmatprep.mubr.msk.bf16.mxu0 %vm2567_vm8, %v3107_v12  ;;  %vm571_vm8 = vcmp.eq.s32.totalorder %v3432_v6, %v452_v40 }
 0x140   : > { %v443_v21 = vpop.permute.xlu1 %442  ;;  %vm949_vm9 = vmor %vm571_vm8, %vm886_vm7 }
 0x141   : > { %vm568_vm12 = vcmp.eq.s32.totalorder %v3432_v6, %v443_v21 }
 0x142   : > { %3061 = vset.pattern.permute.xlu1 %v3105_v0 }
 0x143   : > { %505 = vperm.xlu1 %3061, %v335_v22  }
 0x145   : > { %v758_v24 = vpop.permute.xlu1 %757 }
 0x146   : > { %vm883_vm13 = vcmp.eq.s32.totalorder %v3432_v6, %v758_v24 }
 0x147   : > { %vm946_vm14 = vmor %vm568_vm12, %vm883_vm13  ;;  %3062 = vset.pattern.permute.xlu1 %v3106_v1 }
 0x148   : > { %vm2569_vm15 = vmpackc.low %vm946_vm14, %vm945_vm11  ;;  %820 = vperm.xlu1 %3062, %v652_v26  }
 0x149   : > { %2788 = vmatmul.mubr.msk.bf16.gmra.mrb[28].mxu0 %vm2569_vm15, %v3107_v12  ;;  %vm574_vm15 = vcmp.eq.s32.totalorder %v3432_v6, %v461_v32 }
 0x14a   : > { %v446_v42 = vpop.permute.xlu1 %445 }
 0x14b   : > { %vm569_vm2 = vcmp.eq.s32.totalorder %v3432_v6, %v446_v42 }
 0x14c   : > { %823 = vperm.xlu1 %3062, %v653_v28  }
 0x14f   : > { %v761_v30 = vpop.permute.xlu1 %760 }
 0x150   : > { %3063 = vset.pattern.permute.xlu1 %v3105_v0  ;;  %vm884_vm0 = vcmp.eq.s32.totalorder %v3432_v6, %v761_v30 }
 0x151   : > { %514 = vperm.xlu1 %3063, %v338_v23   ;;  %vm947_vm4 = vmor %vm569_vm2, %vm884_vm0 }
 0x153   : > { %v764_v51 = vpop.permute.xlu1 %763 }
 0x154   : > { %vm885_vm3 = vcmp.eq.s32.totalorder %v3432_v6, %v764_v51 }
 0x155   : > { %3064 = vset.pattern.permute.xlu1 %v3106_v1  ;;  %vm948_vm5 = vmor %vm570_vm1, %vm885_vm3 }
 0x156   : > { %829 = vperm.xlu1 %3064, %v655_v27   ;;  %vm2571_vm6 = vmpackc.low %vm948_vm5, %vm947_vm4  ;;  %vm890_vm5 = vcmp.eq.s32.totalorder %v3432_v6, %v3386_v50  ;;  %v3085_v50 = vld [vmem:[%s4099_s3 + $0x20] sm:$0xff]  }
 0x157   : > { %2791 = vmatprep.mubr.msk.bf16.mxu1 %vm2571_vm6, %v3107_v12  ;;  %vm575_vm6 = vcmp.eq.s32.totalorder %v3432_v6, %v464_v59 }
 0x158   : > { %v455_v36 = vpop.permute.xlu1 %454  ;;  %vm953_vm7 = vmor %vm575_vm6, %vm890_vm5 }
 0x159   : > { %vm572_vm10 = vcmp.eq.s32.totalorder %v3432_v6, %v455_v36 }
 0x15a   : > { %3065 = vset.pattern.permute.xlu1 %v3105_v0 }
 0x15b   : > { %517 = vperm.xlu1 %3065, %v339_v38  }
 0x15d   : > { %v770_v43 = vpop.permute.xlu1 %769 }
 0x15e   : > { %vm887_vm11 = vcmp.eq.s32.totalorder %v3432_v6, %v770_v43 }
 0x15f   : > { %vm950_vm12 = vmor %vm572_vm10, %vm887_vm11  ;;  %3066 = vset.pattern.permute.xlu1 %v3106_v1 }
 0x160   : > { %vm2573_vm13 = vmpackc.low %vm950_vm12, %vm949_vm9  ;;  %832 = vperm.xlu1 %3066, %v656_v34  }
 0x161   : > { %2792 = vmatmul.mubr.msk.bf16.vlgmr.msra.gmra.mrb[0].mxu1 %vm2573_vm13, %v3107_v12 }
 0x162   : > { %v458_v45 = vpop.permute.xlu1 %457  ;;  %2824 = vmatpush3.bf16.msra.mxu1 %v3081_v52 }
 0x163   : > { %vm573_vm0 = vcmp.eq.s32.totalorder %v3432_v6, %v458_v45  ;;  %2825 = vmatprep.subr.bf16.mxu1 %v3082_v56 }
 0x164   : > { %835 = vperm.xlu1 %3066, %v657_v47  }
 0x166   : > { %2826 = vmatpush3.bf16.msra.mxu1 %v3082_v56 }
 0x167   : > { %v773_v37 = vpop.permute.xlu1 %772  ;;  %2827 = vmatprep.subr.bf16.mxu1 %v3083_v46 }
 0x168   : > { %3067 = vset.pattern.permute.xlu1 %v3105_v0  ;;  %vm888_vm14 = vcmp.eq.s32.totalorder %v3432_v6, %v773_v37 }
 0x169   : > { %526 = vperm.xlu1 %3067, %v342_v48   ;;  %vm951_vm1 = vmor %vm573_vm0, %vm888_vm14 }
 0x16a   : > { %2828 = vmatpush3.bf16.msra.mxu1 %v3083_v46 }
 0x16b   : > { %v776_v55 = vpop.permute.xlu1 %775  ;;  %2829 = vmatprep.subr.bf16.mxu1 %v3084_v2 }
 0x16c   : > { %vm889_vm2 = vcmp.eq.s32.totalorder %v3432_v6, %v776_v55 }
 0x16d   : > { %vm952_vm3 = vmor %vm574_vm15, %vm889_vm2  ;;  %3069 = vset.pattern.permute.xlu1 %v3106_v1 }
 0x16e   : > { %vm2575_vm4 = vmpackc.low %vm952_vm3, %vm951_vm1  ;;  %841 = vperm.xlu1 %3069, %v659_v41   ;;  %2830 = vmatpush3.bf16.msra.mxu1 %v3084_v2  ;;  %vm894_vm3 = vcmp.eq.s32.totalorder %v3432_v6, %v3395_v53 }
 0x16f   : > { %2795 = vmatprep.mubr.msk.bf16.mxu1 %vm2575_vm4, %v3107_v12  ;;  %2831 = vmatprep.subr.bf16.mxu1 %v3085_v50 }
 0x170   : > { %v467_v57 = vpop.permute.xlu1 %466 }
 0x171   : > { %vm576_vm8 = vcmp.eq.s32.totalorder %v3432_v6, %v467_v57 }
 0x172   : > { %3070 = vset.pattern.permute.xlu1 %v3105_v0  ;;  %v661_v0 = vadd.s32 64, %v3421_v62  ;;  %2832 = vmatpush3.bf16.msra.mxu1 %v3085_v50  ;;  %v473_v62 = vpop.permute.xlu0 %472 }
 0x173   : > { %529 = vperm.xlu1 %3070, %v343_v29   ;;  %vm578_vm14 = vcmp.eq.s32.totalorder %v3432_v6, %v473_v62 }
 0x175   : > { %v782_v3 = vpop.permute.xlu1 %781 }
 0x176   : > { %vm891_vm9 = vcmp.eq.s32.totalorder %v3432_v6, %v782_v3  ;;  %v476_v31 = vpop.permute.xlu0 %475 }
 0x177   : > { %vm954_vm10 = vmor %vm576_vm8, %vm891_vm9  ;;  %3071 = vset.pattern.permute.xlu1 %v3106_v1  ;;  %v3086_v1 = vld [vmem:[%s4099_s3 + $0x28] sm:$0xff]   ;;  %vm579_vm4 = vcmp.eq.s32.totalorder %v3432_v6, %v476_v31 }
 0x178   : > { %vm2577_vm11 = vmpackc.low %vm954_vm10, %vm953_vm7  ;;  %844 = vperm.xlu1 %3071, %v660_v61   ;;  %2833 = vmatprep.subr.bf16.mxu1 %v3086_v1 }
 0x179   : > { %2796 = vmatmul.mubr.msk.bf16.gmra.mrb[4].mxu1 %vm2577_vm11, %v3107_v12  ;;  %vm957_vm5 = vmor %vm579_vm4, %vm894_vm3 }
 0x17a   : > { %v470_v4 = vpop.permute.xlu1 %469  ;;  %2834 = vmatpush3.bf16.msra.mxu1 %v3086_v1  ;;  %v485_v14 = vpop.permute.xlu0 %484 }
 0x17b   : > { %vm577_vm13 = vcmp.eq.s32.totalorder %v3432_v6, %v470_v4  ;;  %2835 = vmatprep.subr.bf16.mxu1 %v3087_v5 }
 0x17c   : > { %847 = vperm.xlu1 %3071, %v661_v0  }
 0x17e   : > { %2836 = vmatpush3.bf16.msra.mxu1 %v3087_v5  ;;  %v488_v16 = vpop.permute.xlu0 %487 }
 0x17f   : > { %v785_v49 = vpop.permute.xlu1 %784  ;;  %2837 = vmatprep.subr.bf16.mxu1 %v3088_v8 }
 0x180   : > { %850 = vperm.xlu1 %3071, %v662_v33   ;;  %vm892_vm12 = vcmp.eq.s32.totalorder %v3432_v6, %v785_v49 }
 0x181   : > { %vm955_vm15 = vmor %vm577_vm13, %vm892_vm12  ;;  %vm582_vm12 = vcmp.eq.s32.totalorder %v3432_v6, %v485_v14 }
 0x182   : > { %2838 = vmatpush3.bf16.msra.mxu1 %v3088_v8  ;;  %v497_v28 = vpop.permute.xlu0 %496 }
 0x183   : > { %v788_v7 = vpop.permute.xlu1 %787 }
 0x184   : > { %vm893_vm0 = vcmp.eq.s32.totalorder %v3432_v6, %v788_v7 }
 0x185   : > { %vm956_vm1 = vmor %vm578_vm14, %vm893_vm0 }
 0x186   : > { %vm2579_vm2 = vmpackc.low %vm956_vm1, %vm955_vm15  ;;  %vm898_vm1 = vcmp.eq.s32.totalorder %v3432_v6, %v3398_v54  ;;  %v500_v32 = vpop.permute.xlu0 %499 }
 0x187   : > { %2799 = vmatprep.mubr.msk.bf16.mxu1 %vm2579_vm2, %v3107_v12  ;;  %vm583_vm2 = vcmp.eq.s32.totalorder %v3432_v6, %v488_v16 }
 0x188   : > { %v479_v9 = vpop.permute.xlu1 %478  ;;  %vm961_vm3 = vmor %vm583_vm2, %vm898_vm1 }
 0x189   : > { %vm580_vm6 = vcmp.eq.s32.totalorder %v3432_v6, %v479_v9 }
 0x18d   : > { %v794_v10 = vpop.permute.xlu1 %793 }
 0x18e   : > { %vm895_vm7 = vcmp.eq.s32.totalorder %v3432_v6, %v794_v10 }
 0x18f   : > { %vm958_vm8 = vmor %vm580_vm6, %vm895_vm7 }
 0x190   : > { %vm2581_vm9 = vmpackc.low %vm958_vm8, %vm957_vm5 }
 0x191   : > { %2800 = vmatmul.mubr.msk.bf16.gmra.mrb[8].mxu1 %vm2581_vm9, %v3107_v12 }
 0x192   : > { %v482_v11 = vpop.permute.xlu1 %481 }
 0x193   : > { %vm581_vm11 = vcmp.eq.s32.totalorder %v3432_v6, %v482_v11 }
 0x197   : > { %v797_v13 = vpop.permute.xlu1 %796 }
 0x198   : > { %vm896_vm10 = vcmp.eq.s32.totalorder %v3432_v6, %v797_v13 }
 0x199   : > { %vm959_vm13 = vmor %vm581_vm11, %vm896_vm10  ;;  %vm586_vm10 = vcmp.eq.s32.totalorder %v3432_v6, %v497_v28 }
 0x19b   : > { %v800_v53 = vpop.permute.xlu1 %799 }
 0x19c   : > { %vm897_vm14 = vcmp.eq.s32.totalorder %v3432_v6, %v800_v53 }
 0x19d   : > { %vm960_vm15 = vmor %vm582_vm12, %vm897_vm14 }
 0x19e   : > { %vm2583_vm0 = vmpackc.low %vm960_vm15, %vm959_vm13  ;;  %vm902_vm15 = vcmp.eq.s32.totalorder %v3432_v6, %v3408_v58 }
 0x19f   : > { %2803 = vmatprep.mubr.msk.bf16.mxu1 %vm2583_vm0, %v3107_v12  ;;  %vm587_vm0 = vcmp.eq.s32.totalorder %v3432_v6, %v500_v32 }
 0x1a0   : > { %v491_v15 = vpop.permute.xlu1 %490  ;;  %vm965_vm1 = vmor %vm587_vm0, %vm902_vm15 }
 0x1a1   : > { %vm584_vm4 = vcmp.eq.s32.totalorder %v3432_v6, %v491_v15 }
 0x1a5   : > { %v806_v39 = vpop.permute.xlu1 %805 }
 0x1a6   : > { %vm899_vm5 = vcmp.eq.s32.totalorder %v3432_v6, %v806_v39 }
 0x1a7   : > { %vm962_vm6 = vmor %vm584_vm4, %vm899_vm5 }
 0x1a8   : > { %vm2585_vm7 = vmpackc.low %vm962_vm6, %vm961_vm3 }
 0x1a9   : > { %2804 = vmatmul.mubr.msk.bf16.gmra.mrb[12].mxu1 %vm2585_vm7, %v3107_v12 }
 0x1aa   : > { %v494_v17 = vpop.permute.xlu1 %493 }
 0x1ab   : > { %vm585_vm9 = vcmp.eq.s32.totalorder %v3432_v6, %v494_v17  ;;  %v509_v17 = vpop.permute.xlu0 %508 }
 0x1ae   : > { %v2761_v19 = vpop.f32.mrb[0].mxu0 }
 0x1af   : > { %v1250_v54 = vadd.f32 %v2761_v19, %v3664_v18  ;;  %v1241_v20 = vpop.f32.mrb[1].mxu0  ;;  %v809_v44 = vpop.permute.xlu1 %808 }
 0x1b0   : > { %v1242_v21 = vadd.f32 %v3664_v18, %v1241_v20  ;;  %v2762_v22 = vpop.f32.mrb[2].mxu0  ;;  %vm900_vm8 = vcmp.eq.s32.totalorder %v3432_v6, %v809_v44 }
 0x1b1   : > { %v1253_v25 = vadd.f32 %v2762_v22, %v3664_v18  ;;  %v1244_v26 = vpop.f32.mrb[3].mxu0  ;;  %v1497_v42 = vmax.f32 %v1250_v54, 0.0  ;;  %vm963_vm11 = vmor %vm585_vm9, %vm900_vm8  ;;  %vm590_vm8 = vcmp.eq.s32.totalorder %v3432_v6, %v509_v17 }
 0x1b2   : > { %v1245_v24 = vadd.f32 %v3664_v18, %v1244_v26  ;;  %v1495_v35 = vmax.f32 %v1242_v21, 0.0 }
 0x1b3   : > { %v1498_v23 = vmax.f32 %v1253_v25, 0.0  ;;  %v812_v30 = vpop.permute.xlu1 %811 }
 0x1b4   : > { %v1496_v27 = vmax.f32 %v1245_v24, 0.0  ;;  %vm901_vm12 = vcmp.eq.s32.totalorder %v3432_v6, %v812_v30  ;;  %v512_v24 = vpop.permute.xlu0 %511 }
 0x1b5   : > { %v3674_v51 = vpack.c.bf16 %v1498_v23, %v1497_v42  ;;  %vm964_vm13 = vmor %vm586_vm10, %vm901_vm12 }
 0x1b6   : > { %v3676_v36 = vpack.c.bf16 %v1496_v27, %v1495_v35  ;;  %vm2587_vm14 = vmpackc.low %vm964_vm13, %vm963_vm11  ;;  %v2765_v38 = vpop.f32.mrb[4].mxu0  ;;  %vm906_vm13 = vcmp.eq.s32.totalorder %v3432_v6, %v3414_v60 }
 0x1b7   : > { %v1266_v40 = vadd.f32 %v2765_v38, %v3664_v18  ;;  %v1257_v34 = vpop.f32.mrb[5].mxu0  ;;  %2807 = vmatprep.mubr.msk.bf16.mxu1 %vm2587_vm14, %v3107_v12  ;;  %vm591_vm14 = vcmp.eq.s32.totalorder %v3432_v6, %v512_v24 }
 0x1b8   : > { %v1258_v43 = vadd.f32 %v3664_v18, %v1257_v34  ;;  %v2766_v47 = vpop.f32.mrb[6].mxu0  ;;  %v503_v45 = vpop.permute.xlu1 %502  ;;  %vm969_vm15 = vmor %vm591_vm14, %vm906_vm13 }
 0x1b9   : > { %v1269_v48 = vadd.f32 %v2766_v47, %v3664_v18  ;;  %v1260_v37 = vpop.f32.mrb[7].mxu0  ;;  %v1501_v41 = vmax.f32 %v1266_v40, 0.0  ;;  %vm588_vm2 = vcmp.eq.s32.totalorder %v3432_v6, %v503_v45 }
 0x1ba   : > { %v1261_v52 = vadd.f32 %v3664_v18, %v1260_v37  ;;  %v1499_v56 = vmax.f32 %v1258_v43, 0.0 }
 0x1bb   : > { %v1502_v55 = vmax.f32 %v1269_v48, 0.0 }
 0x1bc   : > { %v1500_v57 = vmax.f32 %v1261_v52, 0.0 }
 0x1bd   : > { %v3686_v29 = vpack.c.bf16 %v1502_v55, %v1501_v41  ;;  %v818_v59 = vpop.permute.xlu1 %817  ;;  %v521_v41 = vpop.permute.xlu0 %520 }
 0x1be   : > { %v3689_v46 = vpack.c.bf16 %v1500_v57, %v1499_v56  ;;  %vm903_vm3 = vcmp.eq.s32.totalorder %v3432_v6, %v818_v59  ;;  %v2769_v61 = vpop.f32.mrb[8].mxu0 }
 0x1bf   : > { %vm966_vm4 = vmor %vm588_vm2, %vm903_vm3  ;;  %v1282_v58 = vadd.f32 %v2769_v61, %v3664_v18  ;;  %v1273_v2 = vpop.f32.mrb[9].mxu0 }
 0x1c0   : > { %vm2589_vm5 = vmpackc.low %vm966_vm4, %vm965_vm1  ;;  %v1274_v3 = vadd.f32 %v3664_v18, %v1273_v2  ;;  %v2770_v0 = vpop.f32.mrb[10].mxu0 }
 0x1c1   : > { %v1285_v50 = vadd.f32 %v2770_v0, %v3664_v18  ;;  %v1276_v4 = vpop.f32.mrb[11].mxu0  ;;  %2808 = vmatmul.mubr.msk.bf16.gmra.mrb[16].mxu1 %vm2589_vm5, %v3107_v12  ;;  %v1505_v1 = vmax.f32 %v1282_v58, 0.0  ;;  %v524_v56 = vpop.permute.xlu0 %523 }
 0x1c2   : > { %v1277_v33 = vadd.f32 %v3664_v18, %v1276_v4  ;;  %v506_v49 = vpop.permute.xlu1 %505  ;;  %v1503_v7 = vmax.f32 %v1274_v3, 0.0 }
 0x1c3   : > { %v1506_v62 = vmax.f32 %v1285_v50, 0.0  ;;  %vm589_vm7 = vcmp.eq.s32.totalorder %v3432_v6, %v506_v49 }
 0x1c4   : > { %v1504_v5 = vmax.f32 %v1277_v33, 0.0 }
 0x1c5   : > { %v3697_v8 = vpack.c.bf16 %v1506_v62, %v1505_v1 }
 0x1c6   : > { %v3699_v9 = vpack.c.bf16 %v1504_v5, %v1503_v7  ;;  %v2773_v31 = vpop.f32.mrb[12].mxu0 }
 0x1c7   : > { %v1298_v10 = vadd.f32 %v2773_v31, %v3664_v18  ;;  %v1289_v11 = vpop.f32.mrb[13].mxu0  ;;  %v821_v13 = vpop.permute.xlu1 %820 }
 0x1c8   : > { %v1290_v14 = vadd.f32 %v3664_v18, %v1289_v11  ;;  %v2774_v53 = vpop.f32.mrb[14].mxu0  ;;  %vm904_vm6 = vcmp.eq.s32.totalorder %v3432_v6, %v821_v13 }
 0x1c9   : > { %v1301_v15 = vadd.f32 %v2774_v53, %v3664_v18  ;;  %v1292_v16 = vpop.f32.mrb[15].mxu0  ;;  %v1509_v19 = vmax.f32 %v1298_v10, 0.0  ;;  %vm967_vm9 = vmor %vm589_vm7, %vm904_vm6  ;;  %vm594_vm6 = vcmp.eq.s32.totalorder %v3432_v6, %v521_v41  ;;  %v533_v10 = vpop.permute.xlu0 %532 }
 0x1ca   : > { %v1293_v39 = vadd.f32 %v3664_v18, %v1292_v16  ;;  %v1507_v44 = vmax.f32 %v1290_v14, 0.0 }
 0x1cb   : > { %v1510_v54 = vmax.f32 %v1301_v15, 0.0  ;;  %v824_v20 = vpop.permute.xlu1 %823 }
 0x1cc   : > { %v1508_v21 = vmax.f32 %v1293_v39, 0.0  ;;  %vm905_vm10 = vcmp.eq.s32.totalorder %v3432_v6, %v824_v20 }
 0x1cd   : > { %v3709_v22 = vpack.c.bf16 %v1510_v54, %v1509_v19  ;;  %vm968_vm11 = vmor %vm590_vm8, %vm905_vm10  ;;  %v536_v14 = vpop.permute.xlu0 %535 }
 0x1ce   : > { %v3711_v25 = vpack.c.bf16 %v1508_v21, %v1507_v44  ;;  %vm2591_vm12 = vmpackc.low %vm968_vm11, %vm967_vm9  ;;  %vm595_vm11 = vcmp.eq.s32.totalorder %v3432_v6, %v524_v56 }
 0x1cf   : > { %2811 = vmatprep.mubr.msk.bf16.mxu1 %vm2591_vm12, %v3107_v12  ;;  %vm910_vm12 = vcmp.eq.s32.totalorder %v3432_v6, %v3424_v63 }
 0x1d0   : > { %v515_v26 = vpop.permute.xlu1 %514  ;;  %vm973_vm13 = vmor %vm595_vm11, %vm910_vm12 }
 0x1d1   : > { %vm592_vm0 = vcmp.eq.s32.totalorder %v3432_v6, %v515_v26 }
 0x1d4   : > { %v2777_v28 = vpop.f32.mrb[16].mxu0 }
 0x1d5   : > { %v1314_v42 = vadd.f32 %v2777_v28, %v3664_v18  ;;  %v1305_v23 = vpop.f32.mrb[17].mxu0  ;;  %v830_v30 = vpop.permute.xlu1 %829 }
 0x1d6   : > { %v1306_v35 = vadd.f32 %v3664_v18, %v1305_v23  ;;  %vm907_vm1 = vcmp.eq.s32.totalorder %v3432_v6, %v830_v30  ;;  %v2778_v27 = vpop.f32.mrb[18].mxu0 }
 0x1d7   : > { %vm970_vm2 = vmor %vm592_vm0, %vm907_vm1  ;;  %v1317_v38 = vadd.f32 %v2778_v27, %v3664_v18  ;;  %v1308_v40 = vpop.f32.mrb[19].mxu0  ;;  %v1513_v34 = vmax.f32 %v1314_v42, 0.0 }
 0x1d8   : > { %vm2593_vm3 = vmpackc.low %vm970_vm2, %vm969_vm15  ;;  %v1309_v60 = vadd.f32 %v3664_v18, %v1308_v40  ;;  %v1511_v47 = vmax.f32 %v1306_v35, 0.0 }
 0x1d9   : > { %v1514_v43 = vmax.f32 %v1317_v38, 0.0  ;;  %2812 = vmatmul.mubr.msk.bf16.gmra.mrb[20].mxu1 %vm2593_vm3, %v3107_v12 }
 0x1da   : > { %v1512_v45 = vmax.f32 %v1309_v60, 0.0  ;;  %v518_v48 = vpop.permute.xlu1 %517 }
 0x1db   : > { %v3724_v37 = vpack.c.bf16 %v1514_v43, %v1513_v34  ;;  %vm593_vm5 = vcmp.eq.s32.totalorder %v3432_v6, %v518_v48 }
 0x1dc   : > { %v3726_v32 = vpack.c.bf16 %v1512_v45, %v1511_v47 }
 0x1df   : > { %v833_v52 = vpop.permute.xlu1 %832 }
 0x1e0   : > { %vm908_vm4 = vcmp.eq.s32.totalorder %v3432_v6, %v833_v52 }
 0x1e1   : > { %vm971_vm7 = vmor %vm593_vm5, %vm908_vm4  ;;  %vm598_vm4 = vcmp.eq.s32.totalorder %v3432_v6, %v533_v10 }
 0x1e3   : > { %v836_v55 = vpop.permute.xlu1 %835 }
 0x1e4   : > { %vm909_vm8 = vcmp.eq.s32.totalorder %v3432_v6, %v836_v55 }
 0x1e5   : > { %vm972_vm9 = vmor %vm594_vm6, %vm909_vm8 }
 0x1e6   : > { %vm2595_vm10 = vmpackc.low %vm972_vm9, %vm971_vm7  ;;  %vm599_vm9 = vcmp.eq.s32.totalorder %v3432_v6, %v536_v14  ;;  %v3094_v14 = vld [vmem:[%s4101_s5 + $0x28] sm:$0xff]  }
 0x1e7   : > { %2815 = vmatprep.mubr.msk.bf16.mxu1 %vm2595_vm10, %v3107_v12 }
 0x1e8   : > { %v527_v57 = vpop.permute.xlu1 %526 }
 0x1e9   : > { %vm596_vm14 = vcmp.eq.s32.totalorder %v3432_v6, %v527_v57 }
 0x1ec   : > { %v2781_v59 = vpop.f32.mrb[20].mxu0 }
 0x1ed   : > { %v1330_v61 = vadd.f32 %v2781_v59, %v3664_v18  ;;  %v1321_v58 = vpop.f32.mrb[21].mxu0  ;;  %v842_v2 = vpop.permute.xlu1 %841  ;;  %v3089_v59 = vld [vmem:[%s4101_s5] sm:$0xff]  }
 0x1ee   : > { %v1322_v3 = vadd.f32 %v3664_v18, %v1321_v58  ;;  %vm911_vm15 = vcmp.eq.s32.totalorder %v3432_v6, %v842_v2  ;;  %v2782_v0 = vpop.f32.mrb[22].mxu0  ;;  %2903 = vmatprep.subr.bf16.mxu0 %v3089_v59 }
 0x1ef   : > { %vm974_vm0 = vmor %vm596_vm14, %vm911_vm15  ;;  %v1333_v50 = vadd.f32 %v2782_v0, %v3664_v18  ;;  %v1324_v4 = vpop.f32.mrb[23].mxu0  ;;  %v1517_v63 = vmax.f32 %v1330_v61, 0.0  ;;  %2904 = vmatpush3.bf16.msra.mxu0 %v3089_v59  ;;  %v3090_v61 = vld [vmem:[%s4101_s5 + $0x8] sm:$0xff]  }
 0x1f0   : > { %vm2597_vm1 = vmpackc.low %vm974_vm0, %vm973_vm13  ;;  %v1325_v33 = vadd.f32 %v3664_v18, %v1324_v4  ;;  %v1515_v1 = vmax.f32 %v1322_v3, 0.0  ;;  %2905 = vmatprep.subr.bf16.mxu0 %v3090_v61  ;;  %vm2340_vm13 = vcmask 64512  }
 0x1f1   : > { %v1518_v49 = vmax.f32 %v1333_v50, 0.0  ;;  %2816 = vmatmul.mubr.msk.bf16.gmra.mrb[24].mxu1 %vm2597_vm1, %v3107_v12 }
 0x1f2   : > { %v1516_v62 = vmax.f32 %v1325_v33, 0.0  ;;  %v530_v7 = vpop.permute.xlu1 %529 }
 0x1f3   : > { %v1569_v5 = vpack.c.bf16 %v1518_v49, %v1517_v63  ;;  %vm597_vm3 = vcmp.eq.s32.totalorder %v3432_v6, %v530_v7  ;;  %2906 = vmatpush3.bf16.msra.mxu0 %v3090_v61  ;;  %v3091_v63 = vld [vmem:[%s4101_s5 + $0x10] sm:$0xff]   ;;  %v3092_v49 = vld [vmem:[%s4101_s5 + $0x18] sm:$0xff]  }
 0x1f4   : > { %v1568_v31 = vpack.c.bf16 %v1516_v62, %v1515_v1  ;;  %2907 = vmatprep.subr.bf16.mxu0 %v3091_v63 }
 0x1f7   : > { %v845_v11 = vpop.permute.xlu1 %844  ;;  %2908 = vmatpush3.bf16.msra.mxu0 %v3091_v63 }
 0x1f8   : > { %vm912_vm2 = vcmp.eq.s32.totalorder %v3432_v6, %v845_v11  ;;  %2909 = vmatprep.subr.bf16.mxu0 %v3092_v49 }
 0x1f9   : > { %vm975_vm5 = vmor %vm597_vm3, %vm912_vm2 }
 0x1fb   : > { %v848_v13 = vpop.permute.xlu1 %847  ;;  %2910 = vmatpush3.bf16.msra.mxu0 %v3092_v49 }
 0x1fc   : > { %vm913_vm6 = vcmp.eq.s32.totalorder %v3432_v6, %v848_v13  ;;  %v3093_v13 = vld [vmem:[%s4101_s5 + $0x20] sm:$0xff]  }
 0x1fd   : > { %vm976_vm7 = vmor %vm598_vm4, %vm913_vm6  ;;  %2911 = vmatprep.subr.bf16.mxu0 %v3093_v13 }
 0x1fe   : > { %vm2599_vm8 = vmpackc.low %vm976_vm7, %vm975_vm5 }
 0x1ff   : > { %2819 = vmatprep.mubr.msk.bf16.mxu1 %vm2599_vm8, %v3107_v12  ;;  %v851_v53 = vpop.permute.xlu1 %850  ;;  %2912 = vmatpush3.bf16.msra.mxu0 %v3093_v13 }
 0x200   : > { %vm914_vm10 = vcmp.eq.s32.totalorder %v3432_v6, %v851_v53  ;;  %2913 = vmatprep.subr.bf16.mxu0 %v3094_v14  ;;  %v3095_v53 = vld [vmem:[%s4101_s5 + $0x30] sm:$0xff]  }
 0x201   : > { %vm977_vm11 = vmor %vm599_vm9, %vm914_vm10 }
 0x202   : > { %vm2601_vm12 = vmpackc.low %vm977_vm11, %vm977_vm11 }
 0x203   : > { %2820 = vmatmul.mubr.msk.bf16.gmra.mrb[28].mxu1 %vm2601_vm12, %v3107_v12  ;;  %2914 = vmatpush3.bf16.msra.mxu0 %v3094_v14 }
 0x204   : > { %v2785_v15 = vpop.f32.mrb[24].mxu0  ;;  %2839 = vmatprep.mubr.bf16.mxu1 %v3676_v36  ;;  %2915 = vmatprep.subr.bf16.mxu0 %v3095_v53 }
 0x205   : > { %v1346_v16 = vadd.f32 %v2785_v15, %v3664_v18  ;;  %v1337_v39 = vpop.f32.mrb[25].mxu0  ;;  %v3096_v15 = vld [vmem:[%s4101_s5 + $0x38] sm:$0xff]  }
 0x206   : > { %v1338_v17 = vadd.f32 %v3664_v18, %v1337_v39  ;;  %v2786_v19 = vpop.f32.mrb[26].mxu0 }
 0x207   : > { %v1349_v54 = vadd.f32 %v2786_v19, %v3664_v18  ;;  %v1340_v20 = vpop.f32.mrb[27].mxu0  ;;  %v1521_v21 = vmax.f32 %v1346_v16, 0.0  ;;  %2916 = vmatpush3.bf16.msra.mxu0 %v3095_v53 }
 0x208   : > { %v1341_v44 = vadd.f32 %v3664_v18, %v1340_v20  ;;  %v1519_v26 = vmax.f32 %v1338_v17, 0.0  ;;  %2917 = vmatprep.subr.bf16.mxu0 %v3096_v15 }
 0x209   : > { %v1522_v6 = vmax.f32 %v1349_v54, 0.0 }
 0x20a   : > { %v1520_v24 = vmax.f32 %v1341_v44, 0.0 }
 0x20b   : > { %v1571_v28 = vpack.c.bf16 %v1522_v6, %v1521_v21  ;;  %2840 = vmatmul.mubr.bf16.vlgmr.msra.gmra.mrb[32].mxu1 %v3674_v51  ;;  %2918 = vmatpush3.bf16.msra.mxu0 %v3096_v15 }
 0x20c   : > { %v1570_v12 = vpack.c.bf16 %v1520_v24, %v1519_v26  ;;  %2843 = vmatprep.mubr.bf16.mxu1 %v3689_v46 }
 0x213   : > { %2844 = vmatmul.mubr.bf16.gmra.mrb[36].mxu1 %v3686_v29 }
 0x214   : > { %2847 = vmatprep.mubr.bf16.mxu1 %v3699_v9 }
 0x21b   : > { %2848 = vmatmul.mubr.bf16.gmra.mrb[40].mxu1 %v3697_v8 }
 0x21c   : > { %v2789_v36 = vpop.f32.mrb[28].mxu0  ;;  %2851 = vmatprep.mubr.bf16.mxu1 %v3711_v25 }
 0x21d   : > { %v1362_v42 = vadd.f32 %v2789_v36, %v3664_v18  ;;  %v1353_v23 = vpop.f32.mrb[29].mxu0 }
 0x21e   : > { %v1354_v30 = vadd.f32 %v3664_v18, %v1353_v23  ;;  %v2790_v35 = vpop.f32.mrb[30].mxu0 }
 0x21f   : > { %v1365_v51 = vadd.f32 %v2790_v35, %v3664_v18  ;;  %v1356_v27 = vpop.f32.mrb[31].mxu0  ;;  %v1525_v38 = vmax.f32 %v1362_v42, 0.0 }
 0x220   : > { %v1357_v46 = vadd.f32 %v3664_v18, %v1356_v27  ;;  %v1523_v40 = vmax.f32 %v1354_v30, 0.0 }
 0x221   : > { %v1526_v29 = vmax.f32 %v1365_v51, 0.0 }
 0x222   : > { %v1524_v9 = vmax.f32 %v1357_v46, 0.0 }
 0x223   : > { %v1573_v60 = vpack.c.bf16 %v1526_v29, %v1525_v38  ;;  %2852 = vmatmul.mubr.bf16.gmra.mrb[44].mxu1 %v3709_v22 }
 0x224   : > { %v1572_v8 = vpack.c.bf16 %v1524_v9, %v1523_v40  ;;  %2855 = vmatprep.mubr.bf16.mxu1 %v3726_v32 }
 0x22b   : > { %2856 = vmatmul.mubr.bf16.gmra.mrb[48].mxu1 %v3724_v37 }
 0x22c   : > { %2859 = vmatprep.mubr.bf16.mxu1 %v1568_v31 }
 0x233   : > { %2860 = vmatmul.mubr.bf16.gmra.mrb[52].mxu1 %v1569_v5 }
 0x234   : > { %v2793_v25 = vpop.f32.mrb[0].mxu1  ;;  %2863 = vmatprep.mubr.bf16.mxu1 %v1570_v12 }
 0x235   : > { %v1378_v34 = vadd.f32 %v2793_v25, %v3664_v18  ;;  %v1369_v43 = vpop.f32.mrb[1].mxu1 }
 0x236   : > { %v1370_v47 = vadd.f32 %v3664_v18, %v1369_v43  ;;  %v2794_v45 = vpop.f32.mrb[2].mxu1 }
 0x237   : > { %v1381_v48 = vadd.f32 %v2794_v45, %v3664_v18  ;;  %v1372_v52 = vpop.f32.mrb[3].mxu1  ;;  %v1529_v41 = vmax.f32 %v1378_v34, 0.0 }
 0x238   : > { %v1373_v22 = vadd.f32 %v3664_v18, %v1372_v52  ;;  %v1527_v32 = vmax.f32 %v1370_v47, 0.0 }
 0x239   : > { %v1530_v55 = vmax.f32 %v1381_v48, 0.0 }
 0x23a   : > { %v1528_v56 = vmax.f32 %v1373_v22, 0.0 }
 0x23b   : > { %v1575_v37 = vpack.c.bf16 %v1530_v55, %v1529_v41  ;;  %2864 = vmatmul.mubr.bf16.gmra.mrb[56].mxu1 %v1571_v28 }
 0x23c   : > { %v1574_v57 = vpack.c.bf16 %v1528_v56, %v1527_v32  ;;  %2867 = vmatprep.mubr.bf16.mxu1 %v1572_v8 }
 0x243   : > { %2868 = vmatmul.mubr.bf16.gmra.mrb[60].mxu1 %v1573_v60 }
 0x244   : > { %2871 = vmatprep.mubr.bf16.mxu1 %v1574_v57 }
 0x24b   : > { %2872 = vmatmul.mubr.bf16.gmra.mrb[64].mxu1 %v1575_v37 }
 0x24c   : > { %v2797_v58 = vpop.f32.mrb[4].mxu1 }
 0x24d   : > { %v1394_v2 = vadd.f32 %v2797_v58, %v3664_v18  ;;  %v1385_v3 = vpop.f32.mrb[5].mxu1 }
 0x24e   : > { %v1386_v0 = vadd.f32 %v3664_v18, %v1385_v3  ;;  %v2798_v50 = vpop.f32.mrb[6].mxu1 }
 0x24f   : > { %v1397_v4 = vadd.f32 %v2798_v50, %v3664_v18  ;;  %v1388_v33 = vpop.f32.mrb[7].mxu1  ;;  %v1533_v62 = vmax.f32 %v1394_v2, 0.0 }
 0x250   : > { %v1389_v1 = vadd.f32 %v3664_v18, %v1388_v33  ;;  %v1531_v5 = vmax.f32 %v1386_v0, 0.0 }
 0x251   : > { %v1534_v7 = vmax.f32 %v1397_v4, 0.0 }
 0x252   : > { %v1532_v31 = vmax.f32 %v1389_v1, 0.0 }
 0x253   : > { %v1577_v10 = vpack.c.bf16 %v1534_v7, %v1533_v62 }
 0x254   : > { %v1576_v11 = vpack.c.bf16 %v1532_v31, %v1531_v5 }
 0x256   : > { %2875 = vmatprep.mubr.bf16.mxu1 %v1576_v11 }
 0x257   : > { %2876 = vmatmul.mubr.bf16.gmra.mrb[68].mxu1 %v1577_v10 }
 0x264   : > { %v2801_v16 = vpop.f32.mrb[8].mxu1 }
 0x265   : > { %v1410_v39 = vadd.f32 %v2801_v16, %v3664_v18  ;;  %v1401_v17 = vpop.f32.mrb[9].mxu1 }
 0x266   : > { %v1402_v19 = vadd.f32 %v3664_v18, %v1401_v17  ;;  %v2802_v54 = vpop.f32.mrb[10].mxu1 }
 0x267   : > { %v1413_v20 = vadd.f32 %v2802_v54, %v3664_v18  ;;  %v1404_v44 = vpop.f32.mrb[11].mxu1  ;;  %v1537_v6 = vmax.f32 %v1410_v39, 0.0 }
 0x268   : > { %v1405_v21 = vadd.f32 %v3664_v18, %v1404_v44  ;;  %v1535_v24 = vmax.f32 %v1402_v19, 0.0 }
 0x269   : > { %v1538_v26 = vmax.f32 %v1413_v20, 0.0 }
 0x26a   : > { %v1536_v28 = vmax.f32 %v1405_v21, 0.0 }
 0x26b   : > { %v1579_v12 = vpack.c.bf16 %v1538_v26, %v1537_v6 }
 0x26c   : > { %v1578_v36 = vpack.c.bf16 %v1536_v28, %v1535_v24 }
 0x26e   : > { %2879 = vmatprep.mubr.bf16.mxu1 %v1578_v36 }
 0x26f   : > { %2880 = vmatmul.mubr.bf16.gmra.mrb[72].mxu1 %v1579_v12 }
 0x27c   : > { %v2805_v42 = vpop.f32.mrb[12].mxu1 }
 0x27d   : > { %v1426_v23 = vadd.f32 %v2805_v42, %v3664_v18  ;;  %v1417_v30 = vpop.f32.mrb[13].mxu1 }
 0x27e   : > { %v1418_v35 = vadd.f32 %v3664_v18, %v1417_v30  ;;  %v2806_v51 = vpop.f32.mrb[14].mxu1 }
 0x27f   : > { %v1429_v27 = vadd.f32 %v2806_v51, %v3664_v18  ;;  %v1420_v46 = vpop.f32.mrb[15].mxu1  ;;  %v1541_v29 = vmax.f32 %v1426_v23, 0.0 }
 0x280   : > { %v1421_v38 = vadd.f32 %v3664_v18, %v1420_v46  ;;  %v1539_v9 = vmax.f32 %v1418_v35, 0.0 }
 0x281   : > { %v1542_v40 = vmax.f32 %v1429_v27, 0.0  ;;  %v3827_v27 = vld [vmem:[%s4100_s4] ss:$0 sm:$0xff] }
 0x282   : > { %v1540_v60 = vmax.f32 %v1421_v38, 0.0 }
 0x283   : > { %v1581_v8 = vpack.c.bf16 %v1542_v40, %v1541_v29 }
 0x284   : > { %v1580_v25 = vpack.c.bf16 %v1540_v60, %v1539_v9 }
 0x286   : > { %2883 = vmatprep.mubr.bf16.mxu1 %v1580_v25 }
 0x287   : > { %2884 = vmatmul.mubr.bf16.gmra.mrb[76].mxu1 %v1581_v8 }
 0x294   : > { %v2809_v34 = vpop.f32.mrb[16].mxu1 }
 0x295   : > { %v1442_v43 = vadd.f32 %v2809_v34, %v3664_v18  ;;  %v1433_v47 = vpop.f32.mrb[17].mxu1 }
 0x296   : > { %v1434_v45 = vadd.f32 %v3664_v18, %v1433_v47  ;;  %v2810_v48 = vpop.f32.mrb[18].mxu1 }
 0x297   : > { %v1445_v52 = vadd.f32 %v2810_v48, %v3664_v18  ;;  %v1436_v22 = vpop.f32.mrb[19].mxu1  ;;  %v1545_v55 = vmax.f32 %v1442_v43, 0.0 }
 0x298   : > { %v1437_v41 = vadd.f32 %v3664_v18, %v1436_v22  ;;  %v1543_v56 = vmax.f32 %v1434_v45, 0.0 }
 0x299   : > { %v1546_v32 = vmax.f32 %v1445_v52, 0.0 }
 0x29a   : > { %v1544_v37 = vmax.f32 %v1437_v41, 0.0 }
 0x29b   : > { %v1583_v57 = vpack.c.bf16 %v1546_v32, %v1545_v55 }
 0x29c   : > { %v1582_v59 = vpack.c.bf16 %v1544_v37, %v1543_v56 }
 0x29e   : > { %2887 = vmatprep.mubr.bf16.mxu1 %v1582_v59 }
 0x29f   : > { %2888 = vmatmul.mubr.bf16.gmra.mrb[80].mxu1 %v1583_v57 }
 0x2ac   : > { %v2813_v61 = vpop.f32.mrb[20].mxu1 }
 0x2ad   : > { %v1458_v58 = vadd.f32 %v2813_v61, %v3664_v18  ;;  %v1449_v2 = vpop.f32.mrb[21].mxu1 }
 0x2ae   : > { %v1450_v3 = vadd.f32 %v3664_v18, %v1449_v2  ;;  %v2814_v0 = vpop.f32.mrb[22].mxu1 }
 0x2af   : > { %v1461_v50 = vadd.f32 %v2814_v0, %v3664_v18  ;;  %v1452_v4 = vpop.f32.mrb[23].mxu1  ;;  %v1549_v63 = vmax.f32 %v1458_v58, 0.0 }
 0x2b0   : > { %v1453_v33 = vadd.f32 %v3664_v18, %v1452_v4  ;;  %v1547_v1 = vmax.f32 %v1450_v3, 0.0 }
 0x2b1   : > { %v1550_v49 = vmax.f32 %v1461_v50, 0.0 }
 0x2b2   : > { %v1548_v62 = vmax.f32 %v1453_v33, 0.0 }
 0x2b3   : > { %v1585_v7 = vpack.c.bf16 %v1550_v49, %v1549_v63 }
 0x2b4   : > { %v1584_v5 = vpack.c.bf16 %v1548_v62, %v1547_v1 }
 0x2b6   : > { %2891 = vmatprep.mubr.bf16.mxu1 %v1584_v5 }
 0x2b7   : > { %2892 = vmatmul.mubr.bf16.gmra.mrb[84].mxu1 %v1585_v7 }
 0x2c4   : > { %v2817_v31 = vpop.f32.mrb[24].mxu1 }
 0x2c5   : > { %v1474_v10 = vadd.f32 %v2817_v31, %v3664_v18  ;;  %v1465_v11 = vpop.f32.mrb[25].mxu1 }
 0x2c6   : > { %v1466_v13 = vadd.f32 %v3664_v18, %v1465_v11  ;;  %v2818_v14 = vpop.f32.mrb[26].mxu1 }
 0x2c7   : > { %v1477_v53 = vadd.f32 %v2818_v14, %v3664_v18  ;;  %v1468_v15 = vpop.f32.mrb[27].mxu1  ;;  %v1553_v39 = vmax.f32 %v1474_v10, 0.0 }
 0x2c8   : > { %v1469_v16 = vadd.f32 %v3664_v18, %v1468_v15  ;;  %v1551_v19 = vmax.f32 %v1466_v13, 0.0 }
 0x2c9   : > { %v1554_v17 = vmax.f32 %v1477_v53, 0.0 }
 0x2ca   : > { %v1552_v54 = vmax.f32 %v1469_v16, 0.0 }
 0x2cb   : > { %v1587_v20 = vpack.c.bf16 %v1554_v17, %v1553_v39 }
 0x2cc   : > { %v1586_v44 = vpack.c.bf16 %v1552_v54, %v1551_v19 }
 0x2ce   : > { %2895 = vmatprep.mubr.bf16.mxu1 %v1586_v44 }
 0x2cf   : > { %2896 = vmatmul.mubr.bf16.gmra.mrb[88].mxu1 %v1587_v20 }
 0x2d6   : > { %v2821_v21 = vpop.f32.mrb[28].mxu1 }
 0x2d7   : > { %v1490_v6 = vadd.f32 %v2821_v21, %v3664_v18  ;;  %v1481_v26 = vpop.f32.mrb[29].mxu1 }
 0x2d8   : > { %v1482_v24 = vadd.f32 %v3664_v18, %v1481_v26  ;;  %v2822_v28 = vpop.f32.mrb[30].mxu1 }
 0x2d9   : > { %v1484_v12 = vpop.f32.mrb[31].mxu1  ;;  %v1557_v42 = vmax.f32 %v1490_v6, 0.0 }
 0x2da   : > { %v1485_v36 = vadd.f32 %v3664_v18, %v1484_v12  ;;  %v1555_v23 = vmax.f32 %v1482_v24, 0.0 }
 0x2db   : > { %v1589_v46 = vpack.c.bf16 %v1557_v42, %v1557_v42 }
 0x2dc   : > { %v1556_v30 = vmax.f32 %v1485_v36, 0.0 }
 0x2de   : > { %v1588_v35 = vpack.c.bf16 %v1556_v30, %v1555_v23  ;;  %v2841_v51 = vpop.f32.mrb[32].mxu1 }
 0x2df   : > { %v1695_v38 = vpop.f32.mrb[33].mxu1  ;;  %v1704_v40 = vadd.f32 %v2841_v51, %v3827_v27 }
 0x2e0   : > { %v2842_v29 = vpop.f32.mrb[34].mxu1  ;;  %2899 = vmatprep.mubr.bf16.mxu1 %v1588_v35  ;;  %v1696_v18 = vadd.f32 %v3827_v27, %v1695_v38 }
 0x2e1   : > { %v1707_v9 = vadd.f32 %v2842_v29, %v3827_v27  ;;  %v1698_v60 = vpop.f32.mrb[35].mxu1  ;;  %2900 = vmatmul.mubr.bf16.gmra.mrb[92].mxu1 %v1589_v46 }
 0x2e2   : > { %v1699_v8 = vadd.f32 %v3827_v27, %v1698_v60 }
 0x2e3   : > { %v1950_v25 = vpack.c.bf16 %v1707_v9, %v1704_v40 }
 0x2e4   : > { %v1949_v34 = vpack.c.bf16 %v1699_v8, %v1696_v18 }
 0x2e6   : > { %v2845_v43 = vpop.f32.mrb[36].mxu1  ;;  %2919 = vmatprep.mubr.bf16.mxu0 %v1949_v34 }
 0x2e7   : > { %v1711_v47 = vpop.f32.mrb[37].mxu1  ;;  %2920 = vmatmul.mubr.bf16.vlgmr.msra.gmra.mrb[32].mxu0 %v1950_v25  ;;  %v1720_v48 = vadd.f32 %v2845_v43, %v3827_v27 }
 0x2e8   : > { %v2846_v45 = vpop.f32.mrb[38].mxu1  ;;  %v1712_v41 = vadd.f32 %v3827_v27, %v1711_v47 }
 0x2e9   : > { %v1723_v52 = vadd.f32 %v2846_v45, %v3827_v27  ;;  %v1714_v22 = vpop.f32.mrb[39].mxu1 }
 0x2ea   : > { %v1715_v55 = vadd.f32 %v3827_v27, %v1714_v22 }
 0x2eb   : > { %v1952_v32 = vpack.c.bf16 %v1723_v52, %v1720_v48 }
 0x2ec   : > { %v1951_v56 = vpack.c.bf16 %v1715_v55, %v1712_v41 }
 0x2ee   : > { %v2849_v37 = vpop.f32.mrb[40].mxu1  ;;  %2923 = vmatprep.mubr.bf16.mxu0 %v1951_v56 }
 0x2ef   : > { %v1727_v57 = vpop.f32.mrb[41].mxu1  ;;  %2924 = vmatmul.mubr.bf16.gmra.mrb[36].mxu0 %v1952_v32  ;;  %v1736_v61 = vadd.f32 %v2849_v37, %v3827_v27 }
 0x2f0   : > { %v2850_v59 = vpop.f32.mrb[42].mxu1  ;;  %v1728_v3 = vadd.f32 %v3827_v27, %v1727_v57 }
 0x2f1   : > { %v1739_v58 = vadd.f32 %v2850_v59, %v3827_v27  ;;  %v1730_v2 = vpop.f32.mrb[43].mxu1 }
 0x2f2   : > { %v1731_v0 = vadd.f32 %v3827_v27, %v1730_v2 }
 0x2f3   : > { %v1954_v50 = vpack.c.bf16 %v1739_v58, %v1736_v61 }
 0x2f4   : > { %v1953_v4 = vpack.c.bf16 %v1731_v0, %v1728_v3 }
 0x2f6   : > { %v2853_v33 = vpop.f32.mrb[44].mxu1  ;;  %2927 = vmatprep.mubr.bf16.mxu0 %v1953_v4 }
 0x2f7   : > { %v1743_v63 = vpop.f32.mrb[45].mxu1  ;;  %2928 = vmatmul.mubr.bf16.gmra.mrb[40].mxu0 %v1954_v50  ;;  %v1752_v1 = vadd.f32 %v2853_v33, %v3827_v27 }
 0x2f8   : > { %v2854_v49 = vpop.f32.mrb[46].mxu1  ;;  %v1744_v5 = vadd.f32 %v3827_v27, %v1743_v63 }
 0x2f9   : > { %v1755_v62 = vadd.f32 %v2854_v49, %v3827_v27  ;;  %v1746_v7 = vpop.f32.mrb[47].mxu1 }
 0x2fa   : > { %v1747_v31 = vadd.f32 %v3827_v27, %v1746_v7 }
 0x2fb   : > { %v1956_v10 = vpack.c.bf16 %v1755_v62, %v1752_v1 }
 0x2fc   : > { %v1955_v11 = vpack.c.bf16 %v1747_v31, %v1744_v5 }
 0x2fe   : > { %v2857_v13 = vpop.f32.mrb[48].mxu1  ;;  %2931 = vmatprep.mubr.bf16.mxu0 %v1955_v11 }
 0x2ff   : > { %v1759_v14 = vpop.f32.mrb[49].mxu1  ;;  %2932 = vmatmul.mubr.bf16.gmra.mrb[44].mxu0 %v1956_v10  ;;  %v1768_v15 = vadd.f32 %v2857_v13, %v3827_v27 }
 0x300   : > { %v2858_v53 = vpop.f32.mrb[50].mxu1  ;;  %v1760_v17 = vadd.f32 %v3827_v27, %v1759_v14 }
 0x301   : > { %v1771_v16 = vadd.f32 %v2858_v53, %v3827_v27  ;;  %v1762_v39 = vpop.f32.mrb[51].mxu1 }
 0x302   : > { %v1763_v19 = vadd.f32 %v3827_v27, %v1762_v39 }
 0x303   : > { %v1958_v54 = vpack.c.bf16 %v1771_v16, %v1768_v15 }
 0x304   : > { %v1957_v20 = vpack.c.bf16 %v1763_v19, %v1760_v17 }
 0x306   : > { %v2861_v44 = vpop.f32.mrb[52].mxu1  ;;  %2935 = vmatprep.mubr.bf16.mxu0 %v1957_v20 }
 0x307   : > { %v1775_v21 = vpop.f32.mrb[53].mxu1  ;;  %2936 = vmatmul.mubr.bf16.gmra.mrb[48].mxu0 %v1958_v54  ;;  %v1784_v26 = vadd.f32 %v2861_v44, %v3827_v27 }
 0x308   : > { %v2862_v6 = vpop.f32.mrb[54].mxu1  ;;  %v1776_v12 = vadd.f32 %v3827_v27, %v1775_v21 }
 0x309   : > { %v1787_v24 = vadd.f32 %v2862_v6, %v3827_v27  ;;  %v1778_v28 = vpop.f32.mrb[55].mxu1 }
 0x30a   : > { %v1779_v36 = vadd.f32 %v3827_v27, %v1778_v28 }
 0x30b   : > { %v1960_v42 = vpack.c.bf16 %v1787_v24, %v1784_v26 }
 0x30c   : > { %v1959_v23 = vpack.c.bf16 %v1779_v36, %v1776_v12 }
 0x30e   : > { %v2865_v30 = vpop.f32.mrb[56].mxu1  ;;  %2939 = vmatprep.mubr.bf16.mxu0 %v1959_v23 }
 0x30f   : > { %v1791_v35 = vpop.f32.mrb[57].mxu1  ;;  %2940 = vmatmul.mubr.bf16.gmra.mrb[52].mxu0 %v1960_v42  ;;  %v1800_v46 = vadd.f32 %v2865_v30, %v3827_v27 }
 0x310   : > { %v2866_v51 = vpop.f32.mrb[58].mxu1  ;;  %v1792_v40 = vadd.f32 %v3827_v27, %v1791_v35 }
 0x311   : > { %v1803_v38 = vadd.f32 %v2866_v51, %v3827_v27  ;;  %v1794_v29 = vpop.f32.mrb[59].mxu1 }
 0x312   : > { %v1795_v9 = vadd.f32 %v3827_v27, %v1794_v29 }
 0x313   : > { %v1962_v60 = vpack.c.bf16 %v1803_v38, %v1800_v46 }
 0x314   : > { %v1961_v18 = vpack.c.bf16 %v1795_v9, %v1792_v40 }
 0x316   : > { %v2869_v8 = vpop.f32.mrb[60].mxu1  ;;  %2943 = vmatprep.mubr.bf16.mxu0 %v1961_v18 }
 0x317   : > { %v1807_v25 = vpop.f32.mrb[61].mxu1  ;;  %2944 = vmatmul.mubr.bf16.gmra.mrb[56].mxu0 %v1962_v60  ;;  %v1816_v43 = vadd.f32 %v2869_v8, %v3827_v27 }
 0x318   : > { %v2870_v34 = vpop.f32.mrb[62].mxu1  ;;  %v1808_v48 = vadd.f32 %v3827_v27, %v1807_v25 }
 0x319   : > { %v1819_v47 = vadd.f32 %v2870_v34, %v3827_v27  ;;  %v1810_v45 = vpop.f32.mrb[63].mxu1 }
 0x31a   : > { %v1811_v52 = vadd.f32 %v3827_v27, %v1810_v45 }
 0x31b   : > { %v1964_v22 = vpack.c.bf16 %v1819_v47, %v1816_v43 }
 0x31c   : > { %v1963_v41 = vpack.c.bf16 %v1811_v52, %v1808_v48 }
 0x31e   : > { %v2873_v55 = vpop.f32.mrb[64].mxu1  ;;  %2947 = vmatprep.mubr.bf16.mxu0 %v1963_v41 }
 0x31f   : > { %v1823_v32 = vpop.f32.mrb[65].mxu1  ;;  %2948 = vmatmul.mubr.bf16.gmra.mrb[60].mxu0 %v1964_v22  ;;  %v1832_v37 = vadd.f32 %v2873_v55, %v3827_v27 }
 0x320   : > { %v2874_v56 = vpop.f32.mrb[66].mxu1  ;;  %v1824_v61 = vadd.f32 %v3827_v27, %v1823_v32 }
 0x321   : > { %v1835_v57 = vadd.f32 %v2874_v56, %v3827_v27  ;;  %v1826_v59 = vpop.f32.mrb[67].mxu1 }
 0x322   : > { %v1827_v58 = vadd.f32 %v3827_v27, %v1826_v59 }
 0x323   : > { %v1966_v2 = vpack.c.bf16 %v1835_v57, %v1832_v37 }
 0x324   : > { %v1965_v3 = vpack.c.bf16 %v1827_v58, %v1824_v61 }
 0x326   : > { %2951 = vmatprep.mubr.bf16.mxu0 %v1965_v3 }
 0x327   : > { %2952 = vmatmul.mubr.bf16.gmra.mrb[64].mxu0 %v1966_v2 }
 0x32a   : > { %v2877_v0 = vpop.f32.mrb[68].mxu1 }
 0x32b   : > { %v1839_v50 = vpop.f32.mrb[69].mxu1  ;;  %v1848_v33 = vadd.f32 %v2877_v0, %v3827_v27 }
 0x32c   : > { %v2878_v4 = vpop.f32.mrb[70].mxu1  ;;  %v1840_v1 = vadd.f32 %v3827_v27, %v1839_v50 }
 0x32d   : > { %v1851_v63 = vadd.f32 %v2878_v4, %v3827_v27  ;;  %v1842_v49 = vpop.f32.mrb[71].mxu1 }
 0x32e   : > { %v1843_v62 = vadd.f32 %v3827_v27, %v1842_v49 }
 0x32f   : > { %v1968_v7 = vpack.c.bf16 %v1851_v63, %v1848_v33  ;;  %v3895_v63 = vld [vmem:[%s4102_s6] ss:$0 sm:$0xff] }
 0x330   : > { %v1967_v5 = vpack.c.bf16 %v1843_v62, %v1840_v1 }
 0x332   : > { %2955 = vmatprep.mubr.bf16.mxu0 %v1967_v5 }
 0x333   : > { %2956 = vmatmul.mubr.bf16.gmra.mrb[68].mxu0 %v1968_v7 }
 0x342   : > { %v2881_v31 = vpop.f32.mrb[72].mxu1 }
 0x343   : > { %v1855_v10 = vpop.f32.mrb[73].mxu1  ;;  %v1864_v13 = vadd.f32 %v2881_v31, %v3827_v27 }
 0x344   : > { %v2882_v11 = vpop.f32.mrb[74].mxu1  ;;  %v1856_v15 = vadd.f32 %v3827_v27, %v1855_v10 }
 0x345   : > { %v1867_v14 = vadd.f32 %v2882_v11, %v3827_v27  ;;  %v1858_v53 = vpop.f32.mrb[75].mxu1 }
 0x346   : > { %v1859_v16 = vadd.f32 %v3827_v27, %v1858_v53 }
 0x347   : > { %v1970_v39 = vpack.c.bf16 %v1867_v14, %v1864_v13 }
 0x348   : > { %v1969_v17 = vpack.c.bf16 %v1859_v16, %v1856_v15 }
 0x34a   : > { %2959 = vmatprep.mubr.bf16.mxu0 %v1969_v17 }
 0x34b   : > { %2960 = vmatmul.mubr.bf16.gmra.mrb[72].mxu0 %v1970_v39 }
 0x35a   : > { %v2885_v19 = vpop.f32.mrb[76].mxu1 }
 0x35b   : > { %v1871_v54 = vpop.f32.mrb[77].mxu1  ;;  %v1880_v44 = vadd.f32 %v2885_v19, %v3827_v27 }
 0x35c   : > { %v2886_v20 = vpop.f32.mrb[78].mxu1  ;;  %v1872_v26 = vadd.f32 %v3827_v27, %v1871_v54 }
 0x35d   : > { %v1883_v21 = vadd.f32 %v2886_v20, %v3827_v27  ;;  %v1874_v6 = vpop.f32.mrb[79].mxu1 }
 0x35e   : > { %v1875_v24 = vadd.f32 %v3827_v27, %v1874_v6 }
 0x35f   : > { %v1972_v28 = vpack.c.bf16 %v1883_v21, %v1880_v44 }
 0x360   : > { %v1971_v12 = vpack.c.bf16 %v1875_v24, %v1872_v26 }
 0x362   : > { %2963 = vmatprep.mubr.bf16.mxu0 %v1971_v12 }
 0x363   : > { %2964 = vmatmul.mubr.bf16.gmra.mrb[76].mxu0 %v1972_v28 }
 0x372   : > { %v2889_v36 = vpop.f32.mrb[80].mxu1 }
 0x373   : > { %v1887_v42 = vpop.f32.mrb[81].mxu1  ;;  %v1896_v30 = vadd.f32 %v2889_v36, %v3827_v27 }
 0x374   : > { %v2890_v23 = vpop.f32.mrb[82].mxu1  ;;  %v1888_v46 = vadd.f32 %v3827_v27, %v1887_v42 }
 0x375   : > { %v1899_v35 = vadd.f32 %v2890_v23, %v3827_v27  ;;  %v1890_v51 = vpop.f32.mrb[83].mxu1 }
 0x376   : > { %v1891_v38 = vadd.f32 %v3827_v27, %v1890_v51 }
 0x377   : > { %v1974_v29 = vpack.c.bf16 %v1899_v35, %v1896_v30 }
 0x378   : > { %v1973_v40 = vpack.c.bf16 %v1891_v38, %v1888_v46 }
 0x37a   : > { %2967 = vmatprep.mubr.bf16.mxu0 %v1973_v40 }
 0x37b   : > { %2968 = vmatmul.mubr.bf16.gmra.mrb[80].mxu0 %v1974_v29 }
 0x38a   : > { %v2893_v9 = vpop.f32.mrb[84].mxu1 }
 0x38b   : > { %v1903_v60 = vpop.f32.mrb[85].mxu1  ;;  %v1912_v8 = vadd.f32 %v2893_v9, %v3827_v27 }
 0x38c   : > { %v2894_v18 = vpop.f32.mrb[86].mxu1  ;;  %v1904_v43 = vadd.f32 %v3827_v27, %v1903_v60 }
 0x38d   : > { %v1915_v25 = vadd.f32 %v2894_v18, %v3827_v27  ;;  %v1906_v34 = vpop.f32.mrb[87].mxu1 }
 0x38e   : > { %v1907_v47 = vadd.f32 %v3827_v27, %v1906_v34 }
 0x38f   : > { %v1976_v45 = vpack.c.bf16 %v1915_v25, %v1912_v8 }
 0x390   : > { %v1975_v48 = vpack.c.bf16 %v1907_v47, %v1904_v43 }
 0x392   : > { %2971 = vmatprep.mubr.bf16.mxu0 %v1975_v48 }
 0x393   : > { %2972 = vmatmul.mubr.bf16.gmra.mrb[84].mxu0 %v1976_v45 }
 0x3a2   : > { %v2897_v52 = vpop.f32.mrb[88].mxu1 }
 0x3a3   : > { %v1919_v22 = vpop.f32.mrb[89].mxu1  ;;  %v1928_v55 = vadd.f32 %v2897_v52, %v3827_v27 }
 0x3a4   : > { %v2898_v41 = vpop.f32.mrb[90].mxu1  ;;  %v1920_v37 = vadd.f32 %v3827_v27, %v1919_v22 }
 0x3a5   : > { %v1931_v32 = vadd.f32 %v2898_v41, %v3827_v27  ;;  %v1922_v56 = vpop.f32.mrb[91].mxu1 }
 0x3a6   : > { %v1923_v57 = vadd.f32 %v3827_v27, %v1922_v56 }
 0x3a7   : > { %v1978_v59 = vpack.c.bf16 %v1931_v32, %v1928_v55 }
 0x3a8   : > { %v1977_v61 = vpack.c.bf16 %v1923_v57, %v1920_v37 }
 0x3aa   : > { %2975 = vmatprep.mubr.bf16.mxu0 %v1977_v61 }
 0x3ab   : > { %2976 = vmatmul.mubr.bf16.gmra.mrb[88].mxu0 %v1978_v59 }
 0x3b4   : > { %v2901_v58 = vpop.f32.mrb[92].mxu1 }
 0x3b5   : > { %v1935_v2 = vpop.f32.mrb[93].mxu1  ;;  %v1944_v0 = vadd.f32 %v2901_v58, %v3827_v27 }
 0x3b6   : > { %v2902_v3 = vpop.f32.mrb[94].mxu1  ;;  %v1936_v4 = vadd.f32 %v3827_v27, %v1935_v2 }
 0x3b7   : > { %v1938_v50 = vpop.f32.mrb[95].mxu1  ;;  %v1980_v62 = vpack.c.bf16 %v1944_v0, %v1944_v0 }
 0x3b8   : > { %v1939_v33 = vadd.f32 %v3827_v27, %v1938_v50 }
 0x3ba   : > { %v1979_v49 = vpack.c.bf16 %v1939_v33, %v1936_v4  ;;  %v2921_v1 = vpop.f32.mrb[32].mxu0 }
 0x3bb   : > { %v2095_v27 = vadd.f32 %v2921_v1, %v3895_v63  ;;  %v2086_v7 = vpop.f32.mrb[33].mxu0 }
 0x3bc   : > { %v2087_v5 = vadd.f32 %v3895_v63, %v2086_v7  ;;  %v2922_v31 = vpop.f32.mrb[34].mxu0  ;;  %2979 = vmatprep.mubr.bf16.mxu0 %v1979_v49 }
 0x3bd   : > { %2343 = vst.msk [vmem:[%s3902_s25 + $0x10] sm:$0xff] %vm2340_vm13, %v2095_v27  ;;  %v2098_v10 = vadd.f32 %v2922_v31, %v3895_v63  ;;  %v2089_v11 = vpop.f32.mrb[35].mxu0  ;;  %2980 = vmatmul.mubr.bf16.gmra.mrb[92].mxu0 %v1980_v62 }
 0x3be   : > { %2341 = vst.msk [vmem:[%s3902_s25] sm:$0xff] %vm2340_vm13, %v2087_v5  ;;  %v2090_v13 = vadd.f32 %v3895_v63, %v2089_v11 }
 0x3bf   : > { %2344 = vst.msk [vmem:[%s3902_s25 + $0x18] sm:$0xff] %vm2340_vm13, %v2098_v10 }
 0x3c0   : > { %2342 = vst.msk [vmem:[%s3902_s25 + $0x8] sm:$0xff] %vm2340_vm13, %v2090_v13 }
 0x3c2   : > { %v2925_v14 = vpop.f32.mrb[36].mxu0 }
 0x3c3   : > { %v2111_v53 = vadd.f32 %v2925_v14, %v3895_v63  ;;  %v2102_v15 = vpop.f32.mrb[37].mxu0 }
 0x3c4   : > { %v2103_v16 = vadd.f32 %v3895_v63, %v2102_v15  ;;  %v2926_v39 = vpop.f32.mrb[38].mxu0 }
 0x3c5   : > { %2347 = vst.msk [vmem:[%s3902_s25 + $0x30] sm:$0xff] %vm2340_vm13, %v2111_v53  ;;  %v2114_v17 = vadd.f32 %v2926_v39, %v3895_v63  ;;  %v2105_v19 = vpop.f32.mrb[39].mxu0 }
 0x3c6   : > { %2345 = vst.msk [vmem:[%s3902_s25 + $0x20] sm:$0xff] %vm2340_vm13, %v2103_v16  ;;  %v2106_v54 = vadd.f32 %v3895_v63, %v2105_v19 }
 0x3c7   : > { %2348 = vst.msk [vmem:[%s3902_s25 + $0x38] sm:$0xff] %vm2340_vm13, %v2114_v17 }
 0x3c8   : > { %2346 = vst.msk [vmem:[%s3902_s25 + $0x28] sm:$0xff] %vm2340_vm13, %v2106_v54 }
 0x3ca   : > { %v2929_v20 = vpop.f32.mrb[40].mxu0 }
 0x3cb   : > { %v2127_v44 = vadd.f32 %v2929_v20, %v3895_v63  ;;  %v2118_v21 = vpop.f32.mrb[41].mxu0 }
 0x3cc   : > { %v2119_v6 = vadd.f32 %v3895_v63, %v2118_v21  ;;  %v2930_v26 = vpop.f32.mrb[42].mxu0 }
 0x3cd   : > { %2351 = vst.msk [vmem:[%s3902_s25 + $0x50] sm:$0xff] %vm2340_vm13, %v2127_v44  ;;  %v2130_v24 = vadd.f32 %v2930_v26, %v3895_v63  ;;  %v2121_v28 = vpop.f32.mrb[43].mxu0 }
 0x3ce   : > { %2349 = vst.msk [vmem:[%s3902_s25 + $0x40] sm:$0xff] %vm2340_vm13, %v2119_v6  ;;  %v2122_v12 = vadd.f32 %v3895_v63, %v2121_v28 }
 0x3cf   : > { %2352 = vst.msk [vmem:[%s3902_s25 + $0x58] sm:$0xff] %vm2340_vm13, %v2130_v24 }
 0x3d0   : > { %2350 = vst.msk [vmem:[%s3902_s25 + $0x48] sm:$0xff] %vm2340_vm13, %v2122_v12 }
 0x3d2   : > { %v2933_v36 = vpop.f32.mrb[44].mxu0 }
 0x3d3   : > { %v2143_v42 = vadd.f32 %v2933_v36, %v3895_v63  ;;  %v2134_v23 = vpop.f32.mrb[45].mxu0 }
 0x3d4   : > { %v2135_v30 = vadd.f32 %v3895_v63, %v2134_v23  ;;  %v2934_v35 = vpop.f32.mrb[46].mxu0 }
 0x3d5   : > { %2355 = vst.msk [vmem:[%s3902_s25 + $0x70] sm:$0xff] %vm2340_vm13, %v2143_v42  ;;  %v2146_v51 = vadd.f32 %v2934_v35, %v3895_v63  ;;  %v2137_v46 = vpop.f32.mrb[47].mxu0 }
 0x3d6   : > { %2353 = vst.msk [vmem:[%s3902_s25 + $0x60] sm:$0xff] %vm2340_vm13, %v2135_v30  ;;  %v2138_v38 = vadd.f32 %v3895_v63, %v2137_v46 }
 0x3d7   : > { %2356 = vst.msk [vmem:[%s3902_s25 + $0x78] sm:$0xff] %vm2340_vm13, %v2146_v51 }
 0x3d8   : > { %2354 = vst.msk [vmem:[%s3902_s25 + $0x68] sm:$0xff] %vm2340_vm13, %v2138_v38 }
 0x3da   : > { %v2937_v29 = vpop.f32.mrb[48].mxu0 }
 0x3db   : > { %v2159_v40 = vadd.f32 %v2937_v29, %v3895_v63  ;;  %v2150_v9 = vpop.f32.mrb[49].mxu0 }
 0x3dc   : > { %v2151_v60 = vadd.f32 %v3895_v63, %v2150_v9  ;;  %v2938_v18 = vpop.f32.mrb[50].mxu0 }
 0x3dd   : > { %2359 = vst.msk [vmem:[%s3902_s25 + $0x90] sm:$0xff] %vm2340_vm13, %v2159_v40  ;;  %v2162_v8 = vadd.f32 %v2938_v18, %v3895_v63  ;;  %v2153_v25 = vpop.f32.mrb[51].mxu0 }
 0x3de   : > { %2357 = vst.msk [vmem:[%s3902_s25 + $0x80] sm:$0xff] %vm2340_vm13, %v2151_v60  ;;  %v2154_v34 = vadd.f32 %v3895_v63, %v2153_v25 }
 0x3df   : > { %2360 = vst.msk [vmem:[%s3902_s25 + $0x98] sm:$0xff] %vm2340_vm13, %v2162_v8 }
 0x3e0   : > { %2358 = vst.msk [vmem:[%s3902_s25 + $0x88] sm:$0xff] %vm2340_vm13, %v2154_v34 }
 0x3e2   : > { %v2941_v43 = vpop.f32.mrb[52].mxu0 }
 0x3e3   : > { %v2175_v47 = vadd.f32 %v2941_v43, %v3895_v63  ;;  %v2166_v45 = vpop.f32.mrb[53].mxu0 }
 0x3e4   : > { %v2167_v48 = vadd.f32 %v3895_v63, %v2166_v45  ;;  %v2942_v52 = vpop.f32.mrb[54].mxu0 }
 0x3e5   : > { %2363 = vst.msk [vmem:[%s3902_s25 + $0xb0] sm:$0xff] %vm2340_vm13, %v2175_v47  ;;  %v2178_v22 = vadd.f32 %v2942_v52, %v3895_v63  ;;  %v2169_v41 = vpop.f32.mrb[55].mxu0 }
 0x3e6   : > { %2361 = vst.msk [vmem:[%s3902_s25 + $0xa0] sm:$0xff] %vm2340_vm13, %v2167_v48  ;;  %v2170_v55 = vadd.f32 %v3895_v63, %v2169_v41 }
 0x3e7   : > { %2364 = vst.msk [vmem:[%s3902_s25 + $0xb8] sm:$0xff] %vm2340_vm13, %v2178_v22 }
 0x3e8   : > { %2362 = vst.msk [vmem:[%s3902_s25 + $0xa8] sm:$0xff] %vm2340_vm13, %v2170_v55 }
 0x3ea   : > { %v2945_v32 = vpop.f32.mrb[56].mxu0 }
 0x3eb   : > { %v2191_v56 = vadd.f32 %v2945_v32, %v3895_v63  ;;  %v2182_v37 = vpop.f32.mrb[57].mxu0 }
 0x3ec   : > { %v2183_v57 = vadd.f32 %v3895_v63, %v2182_v37  ;;  %v2946_v59 = vpop.f32.mrb[58].mxu0 }
 0x3ed   : > { %2367 = vst.msk [vmem:[%s3902_s25 + $0xd0] sm:$0xff] %vm2340_vm13, %v2191_v56  ;;  %v2194_v61 = vadd.f32 %v2946_v59, %v3895_v63  ;;  %v2185_v58 = vpop.f32.mrb[59].mxu0 }
 0x3ee   : > { %2365 = vst.msk [vmem:[%s3902_s25 + $0xc0] sm:$0xff] %vm2340_vm13, %v2183_v57  ;;  %v2186_v2 = vadd.f32 %v3895_v63, %v2185_v58 }
 0x3ef   : > { %2368 = vst.msk [vmem:[%s3902_s25 + $0xd8] sm:$0xff] %vm2340_vm13, %v2194_v61 }
 0x3f0   : > { %2366 = vst.msk [vmem:[%s3902_s25 + $0xc8] sm:$0xff] %vm2340_vm13, %v2186_v2 }
 0x3f2   : > { %v2949_v3 = vpop.f32.mrb[60].mxu0 }
 0x3f3   : > { %v2207_v0 = vadd.f32 %v2949_v3, %v3895_v63  ;;  %v2198_v50 = vpop.f32.mrb[61].mxu0 }
 0x3f4   : > { %v2199_v4 = vadd.f32 %v3895_v63, %v2198_v50  ;;  %v2950_v33 = vpop.f32.mrb[62].mxu0 }
 0x3f5   : > { %2371 = vst.msk [vmem:[%s3902_s25 + $0xf0] sm:$0xff] %vm2340_vm13, %v2207_v0  ;;  %v2210_v49 = vadd.f32 %v2950_v33, %v3895_v63  ;;  %v2201_v1 = vpop.f32.mrb[63].mxu0 }
 0x3f6   : > { %2369 = vst.msk [vmem:[%s3902_s25 + $0xe0] sm:$0xff] %vm2340_vm13, %v2199_v4  ;;  %v2202_v62 = vadd.f32 %v3895_v63, %v2201_v1 }
 0x3f7   : > { %2372 = vst.msk [vmem:[%s3902_s25 + $0xf8] sm:$0xff] %vm2340_vm13, %v2210_v49 }
 0x3f8   : > { %2370 = vst.msk [vmem:[%s3902_s25 + $0xe8] sm:$0xff] %vm2340_vm13, %v2202_v62 }
 0x3fa   : > { %v2953_v27 = vpop.f32.mrb[64].mxu0 }
 0x3fb   : > { %v2223_v7 = vadd.f32 %v2953_v27, %v3895_v63  ;;  %v2214_v5 = vpop.f32.mrb[65].mxu0 }
 0x3fc   : > { %v2215_v31 = vadd.f32 %v3895_v63, %v2214_v5  ;;  %v2954_v10 = vpop.f32.mrb[66].mxu0 }
 0x3fd   : > { %2375 = vst.msk [vmem:[%s3902_s25 + $0x110] sm:$0xff] %vm2340_vm13, %v2223_v7  ;;  %v2226_v11 = vadd.f32 %v2954_v10, %v3895_v63  ;;  %v2217_v13 = vpop.f32.mrb[67].mxu0 }
 0x3fe   : > { %2373 = vst.msk [vmem:[%s3902_s25 + $0x100] sm:$0xff] %vm2340_vm13, %v2215_v31  ;;  %v2218_v14 = vadd.f32 %v3895_v63, %v2217_v13 }
 0x3ff   : > { %2376 = vst.msk [vmem:[%s3902_s25 + $0x118] sm:$0xff] %vm2340_vm13, %v2226_v11 }
 0x400   : > { %2374 = vst.msk [vmem:[%s3902_s25 + $0x108] sm:$0xff] %vm2340_vm13, %v2218_v14 }
 0x406   : > { %v2957_v53 = vpop.f32.mrb[68].mxu0 }
 0x407   : > { %v2239_v15 = vadd.f32 %v2957_v53, %v3895_v63  ;;  %v2230_v16 = vpop.f32.mrb[69].mxu0 }
 0x408   : > { %v2231_v39 = vadd.f32 %v3895_v63, %v2230_v16  ;;  %v2958_v17 = vpop.f32.mrb[70].mxu0 }
 0x409   : > { %2379 = vst.msk [vmem:[%s3902_s25 + $0x130] sm:$0xff] %vm2340_vm13, %v2239_v15  ;;  %v2242_v19 = vadd.f32 %v2958_v17, %v3895_v63  ;;  %v2233_v54 = vpop.f32.mrb[71].mxu0 }
 0x40a   : > { %2377 = vst.msk [vmem:[%s3902_s25 + $0x120] sm:$0xff] %vm2340_vm13, %v2231_v39  ;;  %v2234_v20 = vadd.f32 %v3895_v63, %v2233_v54 }
 0x40b   : > { %2380 = vst.msk [vmem:[%s3902_s25 + $0x138] sm:$0xff] %vm2340_vm13, %v2242_v19 }
 0x40c   : > { %2378 = vst.msk [vmem:[%s3902_s25 + $0x128] sm:$0xff] %vm2340_vm13, %v2234_v20 }
 0x41e   : > { %v2961_v44 = vpop.f32.mrb[72].mxu0 }
 0x41f   : > { %v2255_v21 = vadd.f32 %v2961_v44, %v3895_v63  ;;  %v2246_v6 = vpop.f32.mrb[73].mxu0 }
 0x420   : > { %v2247_v26 = vadd.f32 %v3895_v63, %v2246_v6  ;;  %v2962_v24 = vpop.f32.mrb[74].mxu0 }
 0x421   : > { %2383 = vst.msk [vmem:[%s3902_s25 + $0x150] sm:$0xff] %vm2340_vm13, %v2255_v21  ;;  %v2258_v28 = vadd.f32 %v2962_v24, %v3895_v63  ;;  %v2249_v12 = vpop.f32.mrb[75].mxu0 }
 0x422   : > { %2381 = vst.msk [vmem:[%s3902_s25 + $0x140] sm:$0xff] %vm2340_vm13, %v2247_v26  ;;  %v2250_v36 = vadd.f32 %v3895_v63, %v2249_v12 }
 0x423   : > { %2384 = vst.msk [vmem:[%s3902_s25 + $0x158] sm:$0xff] %vm2340_vm13, %v2258_v28 }
 0x424   : > { %2382 = vst.msk [vmem:[%s3902_s25 + $0x148] sm:$0xff] %vm2340_vm13, %v2250_v36 }
 0x436   : > { %v2965_v42 = vpop.f32.mrb[76].mxu0 }
 0x437   : > { %v2271_v23 = vadd.f32 %v2965_v42, %v3895_v63  ;;  %v2262_v30 = vpop.f32.mrb[77].mxu0 }
 0x438   : > { %v2263_v35 = vadd.f32 %v3895_v63, %v2262_v30  ;;  %v2966_v51 = vpop.f32.mrb[78].mxu0 }
 0x439   : > { %2387 = vst.msk [vmem:[%s3902_s25 + $0x170] sm:$0xff] %vm2340_vm13, %v2271_v23  ;;  %v2274_v46 = vadd.f32 %v2966_v51, %v3895_v63  ;;  %v2265_v38 = vpop.f32.mrb[79].mxu0 }
 0x43a   : > { %2385 = vst.msk [vmem:[%s3902_s25 + $0x160] sm:$0xff] %vm2340_vm13, %v2263_v35  ;;  %v2266_v29 = vadd.f32 %v3895_v63, %v2265_v38 }
 0x43b   : > { %2388 = vst.msk [vmem:[%s3902_s25 + $0x178] sm:$0xff] %vm2340_vm13, %v2274_v46 }
 0x43c   : > { %2386 = vst.msk [vmem:[%s3902_s25 + $0x168] sm:$0xff] %vm2340_vm13, %v2266_v29 }
 0x44e   : > { %v2969_v40 = vpop.f32.mrb[80].mxu0 }
 0x44f   : > { %v2287_v9 = vadd.f32 %v2969_v40, %v3895_v63  ;;  %v2278_v60 = vpop.f32.mrb[81].mxu0 }
 0x450   : > { %v2279_v18 = vadd.f32 %v3895_v63, %v2278_v60  ;;  %v2970_v8 = vpop.f32.mrb[82].mxu0 }
 0x451   : > { %2391 = vst.msk [vmem:[%s3902_s25 + $0x190] sm:$0xff] %vm2340_vm13, %v2287_v9  ;;  %v2290_v25 = vadd.f32 %v2970_v8, %v3895_v63  ;;  %v2281_v34 = vpop.f32.mrb[83].mxu0 }
 0x452   : > { %2389 = vst.msk [vmem:[%s3902_s25 + $0x180] sm:$0xff] %vm2340_vm13, %v2279_v18  ;;  %v2282_v43 = vadd.f32 %v3895_v63, %v2281_v34 }
 0x453   : > { %2392 = vst.msk [vmem:[%s3902_s25 + $0x198] sm:$0xff] %vm2340_vm13, %v2290_v25 }
 0x454   : > { %2390 = vst.msk [vmem:[%s3902_s25 + $0x188] sm:$0xff] %vm2340_vm13, %v2282_v43 }
 0x466   : > { %v2973_v47 = vpop.f32.mrb[84].mxu0 }
 0x467   : > { %v2303_v45 = vadd.f32 %v2973_v47, %v3895_v63  ;;  %v2294_v48 = vpop.f32.mrb[85].mxu0 }
 0x468   : > { %v2295_v52 = vadd.f32 %v3895_v63, %v2294_v48  ;;  %v2974_v22 = vpop.f32.mrb[86].mxu0 }
 0x469   : > { %2395 = vst.msk [vmem:[%s3902_s25 + $0x1b0] sm:$0xff] %vm2340_vm13, %v2303_v45  ;;  %v2306_v41 = vadd.f32 %v2974_v22, %v3895_v63  ;;  %v2297_v55 = vpop.f32.mrb[87].mxu0 }
 0x46a   : > { %2393 = vst.msk [vmem:[%s3902_s25 + $0x1a0] sm:$0xff] %vm2340_vm13, %v2295_v52  ;;  %v2298_v32 = vadd.f32 %v3895_v63, %v2297_v55 }
 0x46b   : > { %2396 = vst.msk [vmem:[%s3902_s25 + $0x1b8] sm:$0xff] %vm2340_vm13, %v2306_v41 }
 0x46c   : > { %2394 = vst.msk [vmem:[%s3902_s25 + $0x1a8] sm:$0xff] %vm2340_vm13, %v2298_v32 }
 0x47e   : > { %v2977_v56 = vpop.f32.mrb[88].mxu0 }
 0x47f   : > { %v2319_v37 = vadd.f32 %v2977_v56, %v3895_v63  ;;  %v2310_v57 = vpop.f32.mrb[89].mxu0 }
 0x480   : > { %v2311_v59 = vadd.f32 %v3895_v63, %v2310_v57  ;;  %v2978_v61 = vpop.f32.mrb[90].mxu0 }
 0x481   : > { %2399 = vst.msk [vmem:[%s3902_s25 + $0x1d0] sm:$0xff] %vm2340_vm13, %v2319_v37  ;;  %v2322_v58 = vadd.f32 %v2978_v61, %v3895_v63  ;;  %v2313_v2 = vpop.f32.mrb[91].mxu0 }
 0x482   : > { %2397 = vst.msk [vmem:[%s3902_s25 + $0x1c0] sm:$0xff] %vm2340_vm13, %v2311_v59  ;;  %v2314_v3 = vadd.f32 %v3895_v63, %v2313_v2 }
 0x483   : > { %2400 = vst.msk [vmem:[%s3902_s25 + $0x1d8] sm:$0xff] %vm2340_vm13, %v2322_v58 }
 0x484   : > { %2398 = vst.msk [vmem:[%s3902_s25 + $0x1c8] sm:$0xff] %vm2340_vm13, %v2314_v3 }
 0x490   : > { %v2981_v0 = vpop.f32.mrb[92].mxu0 }
 0x491   : > { %v2335_v50 = vadd.f32 %v2981_v0, %v3895_v63  ;;  %v2326_v4 = vpop.f32.mrb[93].mxu0 }
 0x492   : > { %v2327_v33 = vadd.f32 %v3895_v63, %v2326_v4  ;;  %v2982_v49 = vpop.f32.mrb[94].mxu0 }
 0x493   : > { %2403 = vst.msk [vmem:[%s3902_s25 + $0x1f0] sm:$0xff] %vm2340_vm13, %v2335_v50  ;;  %v2329_v1 = vpop.f32.mrb[95].mxu0 }
 0x494   : > { %2401 = vst.msk [vmem:[%s3902_s25 + $0x1e0] sm:$0xff] %vm2340_vm13, %v2327_v33  ;;  %v2330_v62 = vadd.f32 %v3895_v63, %v2329_v1 }
 0x496   : > { %2402 = vst.msk [vmem:[%s3902_s25 + $0x1e8] sm:$0xff] %vm2340_vm13, %v2330_v62 }
 0x497 PF: > { %s17_s24 = sadd.s32 1, %s3103_s24  }
 0x498   : > { %p14_p4 = scmp.ge.s32.totalorder %s17_s24, 4  }
 0x49a   :  { %16 = sbr.rel (!%p14_p4) target bundleno = 1 (0x1), region = 78 }

</bundles_post_ra>
